<compile_context>
chip_gen: v7x
topology: tpu7x:2x2x1
jax: 0.10.0
libtpu: 0.0.40
codegen_flags: <defaults>
</compile_context>

<pallas_src>
import functools

import jax
import jax.numpy as jnp
from jax.experimental import pallas as pl
from jax.experimental.pallas import tpu as pltpu

IN_F = 28 * 28   # 784  fc1 input width (kept unpadded)
H1 = 256         # fc1 output (already lane-dense)
H2 = 64          # logical fc2 output
H2P = 128        # padded fc2 output (lane-dense)
OUT = 10         # logical logits
OUTP = 128       # padded logits (lane-dense output stores)


def _round_up(n, m):
    return ((n + m - 1) // m) * m


def mlp_kernel(x_ref, w1_ref, b1_ref, w2_ref, b2_ref, w3_ref, b3_ref, o_ref):
    # f32 -> bf16 cast on the VPU (kernel is not VALU-bound), then MXU matmuls
    # with f32 accumulation; bias + ReLU stay in f32.
    x = x_ref[...].astype(jnp.bfloat16)
    # fc1 + ReLU : (TB,784)bf16 @ (784,256)bf16 -> f32
    h1 = jnp.dot(x, w1_ref[...], preferred_element_type=jnp.float32)
    h1 = jnp.maximum(h1 + b1_ref[...], 0.0)
    # fc2 + ReLU : (TB,256) @ (256,128) -> f32   (lanes 64..127 are zero pad)
    h2 = jnp.dot(h1.astype(jnp.bfloat16), w2_ref[...],
                 preferred_element_type=jnp.float32)
    h2 = jnp.maximum(h2 + b2_ref[...], 0.0)
    # fc3 (padded logits) : (TB,128) @ (128,128) -> f32, stored as bf16
    out = jnp.dot(h2.astype(jnp.bfloat16), w3_ref[...],
                  preferred_element_type=jnp.float32)
    o_ref[...] = (out + b3_ref[...]).astype(o_ref.dtype)


@functools.partial(jax.jit, static_argnames=("tb",))
def net_forward(x, padded_params, *, tb=256):
    """x: (B, 784) f32. padded_params: output of prepare_params. -> (B, 10) f32."""
    w1, b1, w2, b2, w3, b3 = padded_params
    B = x.shape[0]

    # Effective batch tile: multiple of 16 (bf16 output sublane pack), no
    # larger than needed, and >= 2 grid steps when the batch allows it so the
    # "parallel" axis can shard across v7x's two TensorCores.
    tb = _round_up(max(tb, 16), 16)
    tb_eff = min(tb, _round_up(B, 16))
    if B <= tb_eff and B > 16:
        tb_eff = _round_up((B + 1) // 2, 16)
    grid = (pl.cdiv(B, tb_eff),)

    out = pl.pallas_call(
        mlp_kernel,
        out_shape=jax.ShapeDtypeStruct((B, OUTP), jnp.bfloat16),
        grid_spec=pltpu.PrefetchScalarGridSpec(
            num_scalar_prefetch=0,
            grid=grid,
            in_specs=[
                pl.BlockSpec((tb_eff, IN_F), lambda i: (i, 0)),  # x batch tile
                pl.BlockSpec((IN_F, H1), lambda i: (0, 0)),      # w1 (resident)
                pl.BlockSpec((1, H1), lambda i: (0, 0)),         # b1
                pl.BlockSpec((H1, H2P), lambda i: (0, 0)),       # w2
                pl.BlockSpec((1, H2P), lambda i: (0, 0)),        # b2
                pl.BlockSpec((H2P, OUTP), lambda i: (0, 0)),     # w3
                pl.BlockSpec((1, OUTP), lambda i: (0, 0)),       # b3
            ],
            out_specs=pl.BlockSpec((tb_eff, OUTP), lambda i: (i, 0)),
        ),
        compiler_params=pltpu.CompilerParams(
            dimension_semantics=("parallel",)),
    )(x, w1, b1, w2, b2, w3, b3)
    return out[:, :OUT].astype(jnp.float32)


def init_params(key):
    # Deterministic synthetic init (PyTorch nn.Linear-like uniform bounds),
    # stored pre-transposed as (in_features, out_features), f32.
    k1, k2, k3, k4, k5, k6 = jax.random.split(key, 6)

    def linear(kw, kb, fan_in, fan_out):
        bound = 1.0 / (fan_in ** 0.5)
        w = jax.random.uniform(kw, (fan_in, fan_out), jnp.float32, -bound, bound)
        b = jax.random.uniform(kb, (1, fan_out), jnp.float32, -bound, bound)
        return w, b

    w1, b1 = linear(k1, k2, IN_F, 256)
    w2, b2 = linear(k3, k4, 256, 64)
    w3, b3 = linear(k5, k6, 64, 10)
    return (w1, b1, w2, b2, w3, b3)


def prepare_params(params):
    """fc2/fc3 zero-padded to 128 lanes; weights -> bf16, biases stay f32."""
    w1, b1, w2, b2, w3, b3 = params

    def pad2(a, shape):
        return jnp.zeros(shape, a.dtype).at[: a.shape[0], : a.shape[1]].set(a)

    w1p = w1.astype(jnp.bfloat16)                       # (784, 256), unpadded
    b1p = b1.astype(jnp.float32)                        # (1, 256)
    w2p = pad2(w2, (H1, H2P)).astype(jnp.bfloat16)      # (256, 128)
    b2p = pad2(b2, (1, H2P)).astype(jnp.float32)        # (1, 128)
    w3p = pad2(w3, (H2P, OUTP)).astype(jnp.bfloat16)    # (128, 128)
    b3p = pad2(b3, (1, OUTP)).astype(jnp.float32)       # (1, 128)
    return (w1p, b1p, w2p, b2p, w3p, b3p)


if __name__ == "__main__":
    key = jax.random.PRNGKey(0)
    kx, kp = jax.random.split(key)

    B = 200  # not a multiple of the tile -> exercises the masked edge block
    x = jax.random.normal(kx, (B, IN_F), dtype=jnp.float32)
    params = init_params(kp)
    prepped = prepare_params(params)

    out = net_forward(x, prepped)
    jax.block_until_ready(out)
    assert out.shape == (B, OUT)
    assert out.dtype == jnp.float32

    # Reference 1: mirrors the kernel's precision (bf16 MXU inputs, f32 acc,
    # bf16 logit store).
    w1p, b1p, w2p, b2p, w3p, b3p = prepped
    xb = x.astype(jnp.bfloat16)
    r1 = jnp.maximum(
        jnp.dot(xb, w1p, preferred_element_type=jnp.float32) + b1p, 0.0)
    r2 = jnp.maximum(
        jnp.dot(r1.astype(jnp.bfloat16), w2p,
                preferred_element_type=jnp.float32) + b2p, 0.0)
    r3 = jnp.dot(r2.astype(jnp.bfloat16), w3p,
                 preferred_element_type=jnp.float32) + b3p
    ref_bf16 = r3.astype(jnp.bfloat16).astype(jnp.float32)[:, :OUT]
    assert jnp.allclose(out, ref_bf16, atol=1e-2, rtol=1e-2)

    # Reference 2: plain f32 math of the original PyTorch module (loose tol to
    # absorb bf16 weight/activation/logit quantization).
    w1, b1, w2, b2, w3, b3 = params
    ref = jnp.maximum(x @ w1 + b1, 0.0)
    ref = jnp.maximum(ref @ w2 + b2, 0.0)
    ref = ref @ w3 + b3
    assert jnp.allclose(out, ref, atol=7e-2, rtol=7e-2)

    print("KERNEL_OK")
</pallas_src>

<mosaic_0001>
module attributes {stable_mosaic.version = 11 : i64} {
  func.func @mlp_kernel(%arg0: i32, %arg1: memref<112x784xf32, #tpu.memory_space<vmem>>, %arg2: memref<784x256xbf16, #tpu.memory_space<vmem>>, %arg3: memref<1x256xf32, #tpu.memory_space<vmem>>, %arg4: memref<256x128xbf16, #tpu.memory_space<vmem>>, %arg5: memref<1x128xf32, #tpu.memory_space<vmem>>, %arg6: memref<128x128xbf16, #tpu.memory_space<vmem>>, %arg7: memref<1x128xf32, #tpu.memory_space<vmem>>, %arg8: memref<112x128xbf16, #tpu.memory_space<vmem>>) attributes {dimension_semantics = [#tpu.dimension_semantics<parallel>], iteration_bounds = array<i64: 2>, scalar_prefetch = 0 : i64, scratch_operands = 0 : i64, tpu.core_type = #tpu.core_type<tc>, window_params = [{transform_indices = @transform_0, window_bounds = array<i64: 112, 784>}, {pipeline_mode = #tpu.pipeline_mode<synchronous>, transform_indices = @transform_1, window_bounds = array<i64: 784, 256>}, {pipeline_mode = #tpu.pipeline_mode<synchronous>, transform_indices = @transform_2, window_bounds = array<i64: 1, 256>}, {pipeline_mode = #tpu.pipeline_mode<synchronous>, transform_indices = @transform_3, window_bounds = array<i64: 256, 128>}, {pipeline_mode = #tpu.pipeline_mode<synchronous>, transform_indices = @transform_4, window_bounds = array<i64: 1, 128>}, {pipeline_mode = #tpu.pipeline_mode<synchronous>, transform_indices = @transform_5, window_bounds = array<i64: 128, 128>}, {pipeline_mode = #tpu.pipeline_mode<synchronous>, transform_indices = @transform_6, window_bounds = array<i64: 1, 128>}, {transform_indices = @transform_7, window_bounds = array<i64: 112, 128>}]} {
    %c0 = arith.constant 0 : index
    %c0_0 = arith.constant 0 : index
    %0 = vector.load %arg1[%c0, %c0_0] : memref<112x784xf32, #tpu.memory_space<vmem>>, vector<112x784xf32>
    %1 = arith.truncf %0 : vector<112x784xf32> to vector<112x784xbf16>
    %c0_1 = arith.constant 0 : index
    %c0_2 = arith.constant 0 : index
    %2 = vector.load %arg2[%c0_1, %c0_2] : memref<784x256xbf16, #tpu.memory_space<vmem>>, vector<784x256xbf16>
    %cst = arith.constant dense<0.000000e+00> : vector<112x256xf32>
    %3 = tpu.matmul %1, %2, %cst {dimension_numbers = #tpu.dot_dimension_numbers<[1], [0], [0], [1], [0, 0, 1, 1], [], []>} : vector<112x784xbf16>, vector<784x256xbf16>, vector<112x256xf32> -> vector<112x256xf32>
    %c0_3 = arith.constant 0 : index
    %c0_4 = arith.constant 0 : index
    %4 = vector.load %arg3[%c0_3, %c0_4] : memref<1x256xf32, #tpu.memory_space<vmem>>, vector<1x256xf32>
    %5 = vector.broadcast %4 : vector<1x256xf32> to vector<112x256xf32>
    %6 = arith.addf %3, %5 : vector<112x256xf32>
    %cst_5 = arith.constant 0.000000e+00 : f32
    %7 = vector.broadcast %cst_5 : f32 to vector<112x256xf32>
    %8 = arith.maximumf %6, %7 : vector<112x256xf32>
    %9 = arith.truncf %8 : vector<112x256xf32> to vector<112x256xbf16>
    %c0_6 = arith.constant 0 : index
    %c0_7 = arith.constant 0 : index
    %10 = vector.load %arg4[%c0_6, %c0_7] : memref<256x128xbf16, #tpu.memory_space<vmem>>, vector<256x128xbf16>
    %cst_8 = arith.constant dense<0.000000e+00> : vector<112x128xf32>
    %11 = tpu.matmul %9, %10, %cst_8 {dimension_numbers = #tpu.dot_dimension_numbers<[1], [0], [0], [1], [0, 0, 1, 1], [], []>} : vector<112x256xbf16>, vector<256x128xbf16>, vector<112x128xf32> -> vector<112x128xf32>
    %c0_9 = arith.constant 0 : index
    %c0_10 = arith.constant 0 : index
    %12 = vector.load %arg5[%c0_9, %c0_10] : memref<1x128xf32, #tpu.memory_space<vmem>>, vector<1x128xf32>
    %13 = vector.broadcast %12 : vector<1x128xf32> to vector<112x128xf32>
    %14 = arith.addf %11, %13 : vector<112x128xf32>
    %cst_11 = arith.constant 0.000000e+00 : f32
    %15 = vector.broadcast %cst_11 : f32 to vector<112x128xf32>
    %16 = arith.maximumf %14, %15 : vector<112x128xf32>
    %17 = arith.truncf %16 : vector<112x128xf32> to vector<112x128xbf16>
    %c0_12 = arith.constant 0 : index
    %c0_13 = arith.constant 0 : index
    %18 = vector.load %arg6[%c0_12, %c0_13] : memref<128x128xbf16, #tpu.memory_space<vmem>>, vector<128x128xbf16>
    %cst_14 = arith.constant dense<0.000000e+00> : vector<112x128xf32>
    %19 = tpu.matmul %17, %18, %cst_14 {dimension_numbers = #tpu.dot_dimension_numbers<[1], [0], [0], [1], [0, 0, 1, 1], [], []>} : vector<112x128xbf16>, vector<128x128xbf16>, vector<112x128xf32> -> vector<112x128xf32>
    %c0_15 = arith.constant 0 : index
    %c0_16 = arith.constant 0 : index
    %20 = vector.load %arg7[%c0_15, %c0_16] : memref<1x128xf32, #tpu.memory_space<vmem>>, vector<1x128xf32>
    %21 = vector.broadcast %20 : vector<1x128xf32> to vector<112x128xf32>
    %22 = arith.addf %19, %21 : vector<112x128xf32>
    %23 = arith.truncf %22 : vector<112x128xf32> to vector<112x128xbf16>
    %c0_17 = arith.constant 0 : index
    %c0_18 = arith.constant 0 : index
    %24 = vector.load %arg8[%c0_17, %c0_18] : memref<112x128xbf16, #tpu.memory_space<vmem>>, vector<112x128xbf16>
    tpu.vector_store %arg8[%c0_17, %c0_18], %23 {strides = array<i32>} : memref<112x128xbf16, #tpu.memory_space<vmem>>, vector<112x128xbf16>,
    return
  }
  func.func @transform_0(%arg0: i32) -> (i32, i32) {
    %c0_i32 = arith.constant 0 : i32
    %c0_i32_0 = arith.constant 0 : i32
    return %arg0, %c0_i32 : i32, i32
  }
  func.func @transform_1(%arg0: i32) -> (i32, i32) {
    %c0_i32 = arith.constant 0 : i32
    %c0_i32_0 = arith.constant 0 : i32
    %c0_i32_1 = arith.constant 0 : i32
    return %c0_i32, %c0_i32_0 : i32, i32
  }
  func.func @transform_2(%arg0: i32) -> (i32, i32) {
    %c0_i32 = arith.constant 0 : i32
    %c0_i32_0 = arith.constant 0 : i32
    %c0_i32_1 = arith.constant 0 : i32
    return %c0_i32, %c0_i32_0 : i32, i32
  }
  func.func @transform_3(%arg0: i32) -> (i32, i32) {
    %c0_i32 = arith.constant 0 : i32
    %c0_i32_0 = arith.constant 0 : i32
    %c0_i32_1 = arith.constant 0 : i32
    return %c0_i32, %c0_i32_0 : i32, i32
  }
  func.func @transform_4(%arg0: i32) -> (i32, i32) {
    %c0_i32 = arith.constant 0 : i32
    %c0_i32_0 = arith.constant 0 : i32
    %c0_i32_1 = arith.constant 0 : i32
    return %c0_i32, %c0_i32_0 : i32, i32
  }
  func.func @transform_5(%arg0: i32) -> (i32, i32) {
    %c0_i32 = arith.constant 0 : i32
    %c0_i32_0 = arith.constant 0 : i32
    %c0_i32_1 = arith.constant 0 : i32
    return %c0_i32, %c0_i32_0 : i32, i32
  }
  func.func @transform_6(%arg0: i32) -> (i32, i32) {
    %c0_i32 = arith.constant 0 : i32
    %c0_i32_0 = arith.constant 0 : i32
    %c0_i32_1 = arith.constant 0 : i32
    return %c0_i32, %c0_i32_0 : i32, i32
  }
  func.func @transform_7(%arg0: i32) -> (i32, i32) {
    %c0_i32 = arith.constant 0 : i32
    %c0_i32_0 = arith.constant 0 : i32
    return %arg0, %c0_i32 : i32, i32
  }
}

</mosaic_0001>

<bundles_post_ra>
// kernel: net_forward.1
= control target key start
LH: loop header
LB: loop body
LE: loop exit
PB: predicated region body
PF: predicated region fallthrough
CT: control target
= control target key end

     0   :  { %s3943_s0 = inlined_call_operand.hbm [shape: f32[200,784], index: 0, kind: input, shape index: {}]   ;;  %s3944_s1 = inlined_call_operand.hbm [shape: bf16[784,256], index: 1, kind: input, shape index: {}]   ;;  %s3945_s2 = inlined_call_operand.vmem [shape: f32[1,256], index: 2, kind: input, shape index: {}]   ;;  %s3946_s3 = inlined_call_operand.hbm [shape: bf16[256,128], index: 3, kind: input, shape index: {}]   ;;  %s3947_s4 = inlined_call_operand.vmem [shape: f32[1,128], index: 4, kind: input, shape index: {}]   ;;  %s3948_s5 = inlined_call_operand.hbm [shape: bf16[128,128], index: 5, kind: input, shape index: {}]   ;;  %s3949_s6 = inlined_call_operand.vmem [shape: f32[1,128], index: 6, kind: input, shape index: {}]   ;;  %s3950_s7 = inlined_call_operand.vmem [shape: bf16[200,128], index: 7, kind: output, shape index: {}]  }
   0x1   :  { %3956 = sst [smem:[#allocation15_spill]] %s3944_s1 }
   0x2   :  { %12 = vsyncpa [#allocation3], 0 }
   0x3   :  { %14 = vsyncpa [#allocation3 + $0x1], 0 }
   0x4   :  { %15 = vsyncpa [#allocation5], 0 }
   0x5   :  { %16 = vsyncpa [#allocation8], 0  ;;  %s3411_s24 = smov 0   ;;  %s3413_s25 = smov 0  }
   0x6   :  { %s3415_s26 = smov 0   ;;  %s3417_s27 = smov 0  }
   0x7 LB: > { %s3430_s28 = sadd.s32 4294967295, %s3324_s27   ;;  %s3433_s29 = sadd.s32 1, %s3324_s27   ;;  %s3324_s27 = sphi %s3417_s27, %s3977_s27   ;;  %s3320_s26 = sphi %s3415_s26, %s3981_s26   ;;  %s3316_s25 = sphi %s3413_s25, %s3980_s25   ;;  %s3312_s24 = sphi %s3411_s24, %s3979_s24  }
   0x8   : > { %3957 = sst [smem:[#allocation13_spill]] %s3433_s29  ;;  %s26_s30 = ssub.s32 %s3324_s27, %s3433_s29 }
   0x9   : > { %s29_s8 = sadd.s32 1, %s3320_s26  ;;  %p27_p0 = scmp.eq.s32.totalorder %s26_s30, 0 }
   0xa   : > { %p36_p1 = scmp.ne.s32.totalorder %s3320_s26, %s3316_s25  ;;  %p37_p2 = scmp.eq.s32.totalorder %s3324_s27, 0 }
   0xb   : > { %p42_p3 = scmp.ne.s32.totalorder %s3316_s25, %s3312_s24  ;;  %p3951_p5 = scmp.eq.s32.totalorder %s3430_s28, 0 }
   0xc   : > { %s3443_s9 = scalar_select %p27_p0, %s3320_s26, %s29_s8  }
   0xd   : > { %p3445_p4 = por %p37_p2, %p36_p1  ;;  %p192_p6 = scmp.eq.s32.totalorder %s3430_s28, 1 }
   0xe   : > { %3958 = sst [smem:[#allocation14_spill]] %s3443_s9  ;;  %p2364_p7 = scmp.ge.s32.totalorder %s3324_s27, 1 }
   0xf   : > { %s3959_s10 = scalar_select %p3445_p4, 1, 0 }
  0x10   : > { %p3454_p8 = por %p3951_p5, %p42_p3  ;;  %p205_p9 = scmp.lt.s32.totalorder %s3324_s27, 3 }
  0x11   : > { %p3459_p10 = por %p192_p6, %p36_p1  ;;  %s3358_s14 = smov [#allocation4]  }
  0x12   : > { %s3960_s11 = scalar_select %p3454_p8, 1, 0 }
  0x13   : > { %s3961_s12 = scalar_select %p3459_p10, 1, 0 }
  0x14   : > { %p3463_p11 = pnand %p2364_p7, %p205_p9  ;;  %s217_s15 = sshll.u32 %s3358_s14, 4  ;;  %s218_s15 = int_to_ptr.vmem [resolvable:$true] %s217_s15 }
  0x15   : > { %s3359_s17 = smov [#allocation6]   ;;  %s3964_s1 = sld [smem:[#allocation15_spill]] }
  0x16   : > { %s3962_s13 = scalar_select %p3463_p11, 1, 0 }
  0x17   : > { %p2837_p12 = pneg %p3463_p11  ;;  %s233_s18 = sshll.u32 %s3359_s17, 4  ;;  %s3475_s18 = int_to_ptr.vmem [resolvable:$true] %s233_s18 }
  0x19   : > { %p3471_p13 = pnand %p2837_p12, %p3951_p5 }
  0x1b   : > { %s3138_s21 = scalar_lea.hbm %s3964_s1, 12544  ;;  %p3485_p1 = pneg %p3471_p13 }
  0x1c   : > { %p3139_p0 = scmp.ne.s32.totalorder %s3964_s1, %s3138_s21  ;;  %p3145_p6 = scmp.lt.u32.totalorder %s3138_s21, %s3964_s1 }
  0x1e   : > { %p3141_p2 = pnand %p3485_p1, %p3139_p0 }
  0x20   : > { %p3142_p3 = pneg %p3141_p2 }
  0x22   : > { %p3147_p7 = pnand %p3145_p6, %p3142_p3 }
  0x24   : > { %3150 = shalt.err (!%p3147_p7)
}
  0x25   : > { %s3151_s14 = scalar_lea.vmem %s218_s15, 12544  ;;  %p3159_p10 = scmp.lt.s32.totalorder %s218_s15, %s218_s15 }
  0x26   : > { %p3152_p9 = scmp.ne.s32.totalorder %s218_s15, %s3151_s14  ;;  %p3160_p8 = scmp.lt.s32.totalorder %s3151_s14, %s3151_s14 }
  0x28   : > { %p3154_p12 = pnand %p3152_p9, %p3485_p1  ;;  %p3161_p11 = por %p3160_p8, %p3159_p10 }
  0x2a   : > { %p3155_p5 = pneg %p3154_p12 }
  0x2c   : > { %p3162_p4 = pnand %p3161_p11, %p3155_p5 }
  0x2e   : > { %3165 = shalt.err (!%p3162_p4)
}
  0x2f   : > { %s3360_s17 = smov 128   ;;  %s3361_s19 = smov 8  }
  0x30   : > { %2840 = dma.hbm_to_vmem [thread:$0]  (!%p3471_p13), %s3964_s1, 12544, %s218_s15, [#allocation5], %s3360_s17, %s3360_s17, %s3361_s19  }
  0x31   : > { %s3166_s30 = scalar_lea.hbm %s3946_s3, 2048 }
  0x32   : > { %p3167_p0 = scmp.ne.s32.totalorder %s3946_s3, %s3166_s30  ;;  %p3173_p8 = scmp.lt.u32.totalorder %s3166_s30, %s3946_s3 }
  0x34   : > { %p3169_p5 = pnand %p3167_p0, %p3485_p1 }
  0x36   : > { %p3170_p4 = pneg %p3169_p5 }
  0x38   : > { %p3175_p10 = pnand %p3173_p8, %p3170_p4 }
  0x3a   : > { %3178 = shalt.err (!%p3175_p10)
}
  0x3b   : > { %s3179_s15 = scalar_lea.vmem %s3475_s18, 2048  ;;  %p3187_p6 = scmp.lt.s32.totalorder %s3475_s18, %s3475_s18 }
  0x3c   : > { %p3180_p11 = scmp.ne.s32.totalorder %s3475_s18, %s3179_s15  ;;  %p3188_p7 = scmp.lt.s32.totalorder %s3179_s15, %s3179_s15 }
  0x3e   : > { %p3182_p2 = pnand %p3180_p11, %p3485_p1  ;;  %p3189_p9 = por %p3188_p7, %p3187_p6 }
  0x40   : > { %p3183_p3 = pneg %p3182_p2 }
  0x42   : > { %p3190_p12 = pnand %p3189_p9, %p3183_p3 }
  0x44   : > { %3193 = shalt.err (!%p3190_p12)
}
  0x45   : > { %s3362_s9 = smov 64   ;;  %s3363_s29 = smov 4  }
  0x46   : > { %2843 = dma.hbm_to_vmem [thread:$0]  (!%p3471_p13), %s3946_s3, 2048, %s3475_s18, [#allocation5], %s3362_s9, %s3362_s9, %s3363_s29  }
  0x47   : > { %s3364_s20 = smov [#allocation7]   ;;  %s3194_s30 = scalar_lea.hbm %s3948_s5, 1024 }
  0x48   : > { %s249_s21 = sshll.u32 %s3364_s20, 4  ;;  %p3195_p0 = scmp.ne.s32.totalorder %s3948_s5, %s3194_s30  ;;  %s250_s21 = int_to_ptr.vmem [resolvable:$true] %s249_s21 }
  0x49   : > { %p3201_p8 = scmp.lt.u32.totalorder %s3194_s30, %s3948_s5 }
  0x4a   : > { %p3197_p5 = pnand %p3195_p0, %p3485_p1 }
  0x4c   : > { %p3198_p4 = pneg %p3197_p5 }
  0x4e   : > { %p3203_p10 = pnand %p3201_p8, %p3198_p4 }
  0x50   : > { %3206 = shalt.err (!%p3203_p10)
}
  0x51   : > { %s3207_s18 = scalar_lea.vmem %s250_s21, 1024  ;;  %p3215_p6 = scmp.lt.s32.totalorder %s250_s21, %s250_s21 }
  0x52   : > { %p3208_p11 = scmp.ne.s32.totalorder %s250_s21, %s3207_s18  ;;  %p3216_p7 = scmp.lt.s32.totalorder %s3207_s18, %s3207_s18 }
  0x54   : > { %p3210_p2 = pnand %p3208_p11, %p3485_p1  ;;  %p3217_p9 = por %p3216_p7, %p3215_p6 }
  0x56   : > { %p3211_p3 = pneg %p3210_p2 }
  0x58   : > { %p3218_p12 = pnand %p3217_p9, %p3211_p3 }
  0x5a   : > { %3221 = shalt.err (!%p3218_p12)
}
  0x5b   : > { %2846 = dma.hbm_to_vmem [thread:$0]  (!%p3471_p13), %s3948_s5, 1024, %s250_s21, [#allocation8], %s3362_s9, %s3362_s9, %s3363_s29  }
  0x5c   : > { %p2368_p0 = scmp.ge.s32.totalorder %s3324_s27, 2 }
  0x5d   : > { %p3966_p5 = scmp.ne.s32.totalorder (!%p2368_p0), %s3959_s10, 0 }
  0x5e   : > { %262 = sbr.rel (%p2368_p0) target bundleno = 137 (0x89), region = 40 }
  0x65   : > { %265 = sbr.rel (!%p3966_p5) target bundleno = 137 (0x89), region = 44  ;;  %s266_s1 = sand.u32 (%p3966_p5), 1, %s3320_s26  }
  0x66   : > { %s271_s24 = smul.u32 (%p3966_p5), 14, %s3324_s27  ;;  %s3550_s30 = scalar_lea.sflag (%p3966_p5), [#allocation3], %s266_s1 }
  0x67   : > { %s2820_s20 = smul.u32 (%p3966_p5), 784, %s266_s1 }
  0x68   : > { %s272_s22 = ssub.s32 (%p3966_p5), 25, %s271_s24 }
  0x69   : > { %p273_p1 = scmp.lt.s32.totalorder (%p3966_p5), %s272_s22, 14  ;;  %s270_s9 = scalar_lea.vmem (%p3966_p5), [#allocation2], %s2820_s20 }
  0x6c   : > { %s3983_s22 = smov (!%p273_p1, %s272_s22), 14 }
  0x6d   : > { %s3547_s23 = smul.u32 896, %s3983_s22 }
  0x6f   : > { %s278_s16 = ssub.s32 12544, %s3547_s23 }
  0x70   : > { %279 = vsyncadd %s3550_s30, %s278_s16  ;;  %p2371_p13 = scmp.ne.s32.totalorder %s3547_s23, 0  ;;  %s2850_s10 = smul.u32 12544, %s3324_s27 }
  0x71   : > { %s285_s29 = sshll.u32 %s270_s9, 4  ;;  %s3226_s27 = scalar_lea.hbm %s3943_s0, 22400  ;;  %s3560_s29 = int_to_ptr.vmem [resolvable:$true] %s285_s29 }
  0x72   : > { %s3558_s14 = scalar_lea.hbm %s3943_s0, %s2850_s10 }
  0x73   : > { %s3222_s15 = scalar_lea.hbm %s3558_s14, %s3547_s23  ;;  %p3227_p11 = scmp.lt.u32.totalorder %s3558_s14, %s3943_s0 }
  0x74   : > { %p3223_p4 = scmp.ne.s32.totalorder %s3558_s14, %s3222_s15  ;;  %p3228_p2 = scmp.lt.u32.totalorder %s3226_s27, %s3222_s15 }
  0x75   : > { %p3230_p6 = scmp.lt.u32.totalorder %s3222_s15, %s3558_s14 }
  0x76   : > { %p3224_p8 = pnand %p3223_p4, %p2371_p13  ;;  %p3229_p3 = por %p3228_p2, %p3227_p11 }
  0x78   : > { %p3225_p10 = pneg %p3224_p8  ;;  %p3231_p7 = por %p3230_p6, %p3229_p3 }
  0x7a   : > { %p3232_p9 = pnand %p3231_p7, %p3225_p10 }
  0x7c   : > { %3235 = shalt.err (!%p3232_p9)
}
  0x7d   : > { %s3236_s24 = scalar_lea.vmem %s3560_s29, %s3547_s23  ;;  %s3365_s20 = smov [#allocation2]  }
  0x7e   : > { %p3237_p12 = scmp.ne.s32.totalorder %s3560_s29, %s3236_s24  ;;  %s3240_s22 = sshll.u32 %s3365_s20, 4  ;;  %s3241_s22 = int_to_ptr.vmem [resolvable:$false] %s3240_s22 }
  0x7f   : > { %s3242_s16 = scalar_lea.vmem %s3241_s22, 25088  ;;  %p3243_p1 = scmp.lt.s32.totalorder %s3560_s29, %s3241_s22 }
  0x80   : > { %p3238_p0 = pnand %p3237_p12, %p2371_p13  ;;  %p3244_p4 = scmp.lt.s32.totalorder %s3242_s16, %s3236_s24 }
  0x82   : > { %p3239_p5 = pneg %p3238_p0  ;;  %p3245_p8 = por %p3244_p4, %p3243_p1 }
  0x84   : > { %p3246_p11 = pnand %p3245_p8, %p3239_p5 }
  0x86   : > { %3249 = shalt.err (!%p3246_p11)
}
  0x87   : > { %s3366_s9 = smov 896   ;;  %s3367_s10 = smov 56  }
  0x88   : > { %291 = dma.hbm_to_vmem [thread:$0]  (%p2371_p13), %s3558_s14, %s3547_s23, %s3560_s29, %s3550_s30, %s3366_s9, %s3366_s9, %s3367_s10  }
  0x89 PF: > { %p3967_p10 = scmp.ne.s32.totalorder %s3962_s13, 0 }
  0x8a   : > { %s3590_s21 = sand.u32 (!%p3967_p10), 1, %s3316_s25   ;;  %p3968_p2 = scmp.ne.s32.totalorder (!%p3967_p10), %s3960_s11, 0 }
  0x8b   : > { %297 = sbr.rel (%p3967_p10) target bundleno = 1122 (0x462), region = 48  ;;  %s300_s15 = scalar_lea.sflag (!%p3967_p10), [#allocation3], %s3590_s21 }
  0x8c   : > { %s2822_s8 = smul.u32 (!%p3967_p10), 784, %s3590_s21 }
  0x8e   : > { %s3594_s18 = scalar_lea.vmem (!%p3967_p10), [#allocation2], %s2822_s8 }
  0x92   : > { %3299 = dma.done.wait (%p3968_p2), %s300_s15, 12544  }
  0x93   : > { %3301 = vsyncadd (%p3968_p2), %s300_s15, 4294954752  ;;  %p3969_p13 = scmp.eq.s32.totalorder %s3430_s28, 0 }
  0x95   : > { %3303 = dma.done.wait (%p3969_p13), [#allocation5], 14592   ;;  %p3970_p3 = pmov %p3969_p13 }
  0x97   : > { %3305 = vsyncadd (%p3970_p3), [#allocation5], 4294952704  ;;  %p3971_p6 = pmov %p3970_p3 }
  0x98   : > { %p3972_p7 = pmov %p3970_p3 }
  0x99   : > { %3307 = dma.done.wait (%p3971_p6), [#allocation8], 1024  }
  0x9a   : > { %3309 = vsyncadd (%p3972_p7), [#allocation8], 4294966272  ;;  %v2963_v0 = vld [vmem:[#allocation4 + $0x104] ss:$8 sps:$4 sm:$0xff]   ;;  %v2965_v1 = vld [vmem:[#allocation4 + $0x100] ss:$8 sps:$4 sm:$0xff]  }
  0x9b   : > { %1229 = vmatprep.subr.bf16.mxu0 %v2963_v0  ;;  %v2966_v2 = vld [vmem:[#allocation4 + $0x114] ss:$8 sps:$4 sm:$0xff]   ;;  %v2968_v3 = vld [vmem:[#allocation4 + $0x110] ss:$8 sps:$4 sm:$0xff]   ;;  %v2969_v4 = vld [vmem:[#allocation4 + $0x124] ss:$8 sps:$4 sm:$0xff]  }
  0x9c   : > { %1230 = vmatpush1.bf16.msra.mxu0 %v2965_v1  ;;  %v2971_v5 = vld [vmem:[#allocation4 + $0x120] ss:$8 sps:$4 sm:$0xff]   ;;  %v2972_v6 = vld [vmem:[#allocation4 + $0x134] ss:$8 sps:$4 sm:$0xff]   ;;  %v2974_v7 = vld [vmem:[#allocation4 + $0x130] ss:$8 sps:$4 sm:$0xff]  }
  0x9d   : > { %1231 = vmatprep.subr.bf16.mxu0 %v2966_v2  ;;  %v2975_v8 = vld [vmem:[#allocation4 + $0x144] ss:$8 sps:$4 sm:$0xff]   ;;  %v2977_v9 = vld [vmem:[#allocation4 + $0x140] ss:$8 sps:$4 sm:$0xff]   ;;  %v2978_v10 = vld [vmem:[#allocation4 + $0x154] ss:$8 sps:$4 sm:$0xff]  }
  0x9e   : > { %v2980_v11 = vld [vmem:[#allocation4 + $0x150] ss:$8 sps:$4 sm:$0xff]   ;;  %v2981_v12 = vld [vmem:[#allocation4 + $0x164] ss:$8 sps:$4 sm:$0xff]   ;;  %v2983_v16 = vld [vmem:[#allocation4 + $0x160] ss:$8 sps:$4 sm:$0xff]  }
  0x9f   : > { %v360_v13 = vld [vmem:[%s3594_s18 + $0x18] sm:$0xff]  ;;  %v367_v14 = vld [vmem:[%s3594_s18 + $0x50] sm:$0xff]  ;;  %v366_v44 = vld [vmem:[%s3594_s18 + $0x48] sm:$0xff]  ;;  %vm1104_vm0 = vcmask 130048   ;;  %vm3370_vm1 = vmmov 0   ;;  %s2823_s17 = smul.u32 56, %s3590_s21 }
  0xa0   : > { %1232 = vmatpush1.bf16.msra.mxu0 %v2968_v3  ;;  %v458_v15 = vpack.c.bf16 %v367_v14, %v360_v13  ;;  %v2984_v17 = vld [vmem:[#allocation4 + $0x174] ss:$8 sps:$4 sm:$0xff]   ;;  %v2986_v18 = vld [vmem:[#allocation4 + $0x170] ss:$8 sps:$4 sm:$0xff]   ;;  %v2987_v19 = vld [vmem:[#allocation4 + $0x184] ss:$8 sps:$4 sm:$0xff]  }
  0xa1   : > { %1233 = vmatprep.subr.bf16.mxu0 %v2969_v4  ;;  %v2989_v20 = vld [vmem:[#allocation4 + $0x180] ss:$8 sps:$4 sm:$0xff]   ;;  %v2990_v21 = vld [vmem:[#allocation4 + $0x194] ss:$8 sps:$4 sm:$0xff]   ;;  %v2992_v22 = vld [vmem:[#allocation4 + $0x190] ss:$8 sps:$4 sm:$0xff]  }
  0xa2   : > { %1261 = vmatprep.mubr.bf16.mxu0 %v458_v15  ;;  %v2993_v23 = vld [vmem:[#allocation4 + $0x1a4] ss:$8 sps:$4 sm:$0xff]   ;;  %v2995_v24 = vld [vmem:[#allocation4 + $0x1a0] ss:$8 sps:$4 sm:$0xff]   ;;  %v2996_v25 = vld [vmem:[#allocation4 + $0x1b4] ss:$8 sps:$4 sm:$0xff]  }
  0xa3   : > { %v2998_v26 = vld [vmem:[#allocation4 + $0x1b0] ss:$8 sps:$4 sm:$0xff]   ;;  %v2999_v27 = vld [vmem:[#allocation4 + $0x1c4] ss:$8 sps:$4 sm:$0xff]   ;;  %v3001_v28 = vld [vmem:[#allocation4 + $0x1c0] ss:$8 sps:$4 sm:$0xff]  }
  0xa4   : > { %1234 = vmatpush1.bf16.msra.mxu0 %v2971_v5  ;;  %v3050_v29 = vld [vmem:[#allocation4 + $0x4] ss:$8 sps:$4 sm:$0xff]   ;;  %v3002_v30 = vld [vmem:[#allocation4 + $0x1d4] ss:$8 sps:$4 sm:$0xff]   ;;  %v3055_v31 = vld [vmem:[#allocation4] ss:$8 sps:$4 sm:$0xff]  }
  0xa5   : > { %1235 = vmatprep.subr.bf16.mxu0 %v2972_v6  ;;  %1126 = vmatprep.subr.bf16.mxu1 %v3050_v29  ;;  %v3056_v32 = vld [vmem:[#allocation4 + $0x14] ss:$8 sps:$4 sm:$0xff]   ;;  %v3004_v33 = vld [vmem:[#allocation4 + $0x1d0] ss:$8 sps:$4 sm:$0xff]   ;;  %v3005_v34 = vld [vmem:[#allocation4 + $0x1e4] ss:$8 sps:$4 sm:$0xff]  }
  0xa6   : > { %1127 = vmatpush1.bf16.msra.mxu1 %v3055_v31  ;;  %v3061_v35 = vld [vmem:[#allocation4 + $0x10] ss:$8 sps:$4 sm:$0xff]   ;;  %v3062_v36 = vld [vmem:[#allocation4 + $0x24] ss:$8 sps:$4 sm:$0xff]   ;;  %v3007_v37 = vld [vmem:[#allocation4 + $0x1e0] ss:$8 sps:$4 sm:$0xff]  }
  0xa7   : > { %1128 = vmatprep.subr.bf16.mxu1 %v3056_v32  ;;  %v3067_v38 = vld [vmem:[#allocation4 + $0x20] ss:$8 sps:$4 sm:$0xff]   ;;  %v3008_v39 = vld [vmem:[#allocation4 + $0x1f4] ss:$8 sps:$4 sm:$0xff]   ;;  %v3010_v40 = vld [vmem:[#allocation4 + $0x1f0] ss:$8 sps:$4 sm:$0xff]  }
  0xa8   : > { %1236 = vmatpush1.bf16.msra.mxu0 %v2974_v7  ;;  %v359_v41 = vld [vmem:[%s3594_s18 + $0x10] sm:$0xff]  ;;  %v374_v45 = vld [vmem:[%s3594_s18 + $0x88] sm:$0xff]  ;;  %v381_v46 = vld [vmem:[%s3594_s18 + $0xc0] sm:$0xff]  ;;  %s3853_s27 = scalar_lea.vmem [#allocation9], %s2823_s17   ;;  %p3973_p9 = scmp.ne.s32.totalorder %s3961_s12, 0 }
  0xa9   : > { %1237 = vmatprep.subr.bf16.mxu0 %v2975_v8  ;;  %v3068_v42 = vld [vmem:[#allocation4 + $0x34] ss:$8 sps:$4 sm:$0xff]   ;;  %v3013_v43 = vld [vmem:[#allocation4 + $0x204] ss:$8 sps:$4 sm:$0xff]   ;;  %v3073_v47 = vld [vmem:[#allocation4 + $0x30] ss:$8 sps:$4 sm:$0xff]   ;;  %v457_v49 = vpack.c.bf16 %v366_v44, %v359_v41  ;;  %v465_v52 = vpack.c.bf16 %v381_v46, %v374_v45 }
  0xaa   : > { %1129 = vmatpush1.bf16.msra.mxu1 %v3061_v35  ;;  %v3074_v48 = vld [vmem:[#allocation4 + $0x44] ss:$8 sps:$4 sm:$0xff]   ;;  %v3011_v50 = vld [vmem:[#allocation4 + $0x200] ss:$8 sps:$4 sm:$0xff]   ;;  %v3016_v51 = vld [vmem:[#allocation4 + $0x214] ss:$8 sps:$4 sm:$0xff]  }
  0xab   : > { %1130 = vmatprep.subr.bf16.mxu1 %v3062_v36  ;;  %v3076_v53 = vld [vmem:[#allocation4 + $0x40] ss:$8 sps:$4 sm:$0xff]   ;;  %v3014_v54 = vld [vmem:[#allocation4 + $0x210] ss:$8 sps:$4 sm:$0xff]   ;;  %v3077_v55 = vld [vmem:[#allocation4 + $0x54] ss:$8 sps:$4 sm:$0xff]  }
  0xac   : > { %1238 = vmatpush1.bf16.msra.mxu0 %v2977_v9  ;;  %v3019_v56 = vld [vmem:[#allocation4 + $0x224] ss:$8 sps:$4 sm:$0xff]   ;;  %v3079_v61 = vld [vmem:[#allocation4 + $0x50] ss:$8 sps:$4 sm:$0xff]   ;;  %v3017_v0 = vld [vmem:[#allocation4 + $0x220] ss:$8 sps:$4 sm:$0xff]  }
  0xad   : > { %1239 = vmatprep.subr.bf16.mxu0 %v2978_v10  ;;  %v373_v57 = vld [vmem:[%s3594_s18 + $0x80] sm:$0xff]  ;;  %v380_v58 = vld [vmem:[%s3594_s18 + $0xb8] sm:$0xff]  ;;  %v395_v60 = vld [vmem:[%s3594_s18 + $0x130] sm:$0xff]  ;;  %s2062_s19 = smul.u32 (%p3973_p9), 14, %s3430_s28 }
  0xae   : > { %1131 = vmatpush1.bf16.msra.mxu1 %v3067_v38  ;;  %v388_v59 = vld [vmem:[%s3594_s18 + $0xf8] sm:$0xff]  ;;  %v464_v63 = vpack.c.bf16 %v380_v58, %v373_v57  ;;  %v387_v7 = vld [vmem:[%s3594_s18 + $0xf0] sm:$0xff]  ;;  %v394_v8 = vld [vmem:[%s3594_s18 + $0x128] sm:$0xff]  ;;  %s2549_s1 = smul.u32 (%p3973_p9), 56, %s3430_s28 }
  0xaf   : > { %1132 = vmatprep.subr.bf16.mxu1 %v3068_v42  ;;  %v3080_v62 = vld [vmem:[#allocation4 + $0x64] ss:$8 sps:$4 sm:$0xff]   ;;  %v3022_v1 = vld [vmem:[#allocation4 + $0x234] ss:$8 sps:$4 sm:$0xff]   ;;  %v472_v2 = vpack.c.bf16 %v395_v60, %v388_v59  ;;  %v3082_v3 = vld [vmem:[#allocation4 + $0x60] ss:$8 sps:$4 sm:$0xff]   ;;  %v471_v13 = vpack.c.bf16 %v394_v8, %v387_v7 }
  0xb0   : > { %1240 = vmatpush1.bf16.msra.mxu0 %v2980_v11  ;;  %v3020_v4 = vld [vmem:[#allocation4 + $0x230] ss:$8 sps:$4 sm:$0xff]   ;;  %v3083_v5 = vld [vmem:[#allocation4 + $0x74] ss:$8 sps:$4 sm:$0xff]   ;;  %v3025_v6 = vld [vmem:[#allocation4 + $0x244] ss:$8 sps:$4 sm:$0xff]   ;;  %s3869_s16 = scalar_lea.vmem (%p3973_p9), %s3950_s7, %s2549_s1  }
  0xb1   : > { %1241 = vmatprep.subr.bf16.mxu0 %v2981_v12  ;;  %v402_v9 = vld [vmem:[%s3594_s18 + $0x168] sm:$0xff]  ;;  %v409_v10 = vld [vmem:[%s3594_s18 + $0x1a0] sm:$0xff]  ;;  %v415_v38 = vld [vmem:[%s3594_s18 + $0x1d0] sm:$0xff]  ;;  %s2063_s24 = ssub.s32 (%p3973_p9), 25, %s2062_s19 }
  0xb2   : > { %1133 = vmatpush1.bf16.msra.mxu1 %v3073_v47  ;;  %v3085_v11 = vld [vmem:[#allocation4 + $0x70] ss:$8 sps:$4 sm:$0xff]   ;;  %v3086_v12 = vld [vmem:[#allocation4 + $0x84] ss:$8 sps:$4 sm:$0xff]   ;;  %v3023_v14 = vld [vmem:[#allocation4 + $0x240] ss:$8 sps:$4 sm:$0xff]  }
  0xb3   : > { %1134 = vmatprep.subr.bf16.mxu1 %v3074_v48  ;;  %v3028_v15 = vld [vmem:[#allocation4 + $0x254] ss:$8 sps:$4 sm:$0xff]   ;;  %v3029_v31 = vld [vmem:[#allocation4 + $0x260] ss:$8 sps:$4 sm:$0xff]   ;;  %v3032_v36 = vld [vmem:[#allocation4 + $0x270] ss:$8 sps:$4 sm:$0xff]  }
  0xb4   : > { %1242 = vmatpush1.bf16.msra.mxu0 %v2983_v16  ;;  %v479_v16 = vpack.c.bf16 %v409_v10, %v402_v9  ;;  %v3095_v35 = vld [vmem:[#allocation4 + $0xb4] ss:$8 sps:$4 sm:$0xff]   ;;  %v3097_v42 = vld [vmem:[#allocation4 + $0xb0] ss:$8 sps:$4 sm:$0xff]   ;;  %v3035_v45 = vld [vmem:[#allocation4 + $0x280] ss:$8 sps:$4 sm:$0xff]  }
  0xb5   : > { %1243 = vmatprep.subr.bf16.mxu0 %v2984_v17  ;;  %v3088_v17 = vld [vmem:[#allocation4 + $0x80] ss:$8 sps:$4 sm:$0xff]   ;;  %v3040_v46 = vld [vmem:[#allocation4 + $0x294] ss:$8 sps:$4 sm:$0xff]   ;;  %v3104_v57 = vld [vmem:[#allocation4 + $0xe4] ss:$8 sps:$4 sm:$0xff]  }
  0xb6   : > { %1135 = vmatpush1.bf16.msra.mxu1 %v3076_v53  ;;  %v437_v41 = vld [vmem:[%s3594_s18 + $0x280] sm:$0xff]  ;;  %v364_v9 = vld [vmem:[%s3594_s18 + $0x38] sm:$0xff]  ;;  %p2064_p12 = scmp.lt.s32.totalorder (%p3973_p9), %s2063_s24, 14 }
  0xb7   : > { %1136 = vmatprep.subr.bf16.mxu1 %v3077_v55  ;;  %v3100_v48 = vld [vmem:[#allocation4 + $0xc0] ss:$8 sps:$4 sm:$0xff]   ;;  %v3043_v53 = vld [vmem:[#allocation4 + $0x2a4] ss:$8 sps:$4 sm:$0xff]   ;;  %v3046_v59 = vld [vmem:[#allocation4 + $0x2b4] ss:$8 sps:$4 sm:$0xff]  }
  0xb8   : > { %1244 = vmatpush1.bf16.msra.mxu0 %v2986_v18  ;;  %v3026_v18 = vld [vmem:[#allocation4 + $0x250] ss:$8 sps:$4 sm:$0xff]   ;;  %v3041_v58 = vld [vmem:[#allocation4 + $0x2a0] ss:$8 sps:$4 sm:$0xff]  }
  0xb9   : > { %1245 = vmatprep.subr.bf16.mxu0 %v2987_v19  ;;  %v3089_v19 = vld [vmem:[#allocation4 + $0x94] ss:$8 sps:$4 sm:$0xff]   ;;  %v3047_v7 = vld [vmem:[#allocation4 + $0x2c0] ss:$8 sps:$4 sm:$0xff]  }
  0xba   : > { %1137 = vmatpush1.bf16.msra.mxu1 %v3079_v61  ;;  %v451_v55 = vld [vmem:[%s3594_s18 + $0x2f0] sm:$0xff]  ;;  %v357_v8 = vld [vmem:[%s3594_s18] sm:$0xff] }
  0xbb   : > { %1138 = vmatprep.subr.bf16.mxu1 %v3080_v62  ;;  %v3106_v61 = vld [vmem:[#allocation4 + $0xe0] ss:$8 sps:$4 sm:$0xff]   ;;  %v3110_v10 = vld [vmem:[#allocation6 + $0x40] sm:$0xff]  }
  0xbc   : > { %1246 = vmatpush1.bf16.msra.mxu0 %v2989_v20  ;;  %v3031_v20 = vld [vmem:[#allocation4 + $0x264] ss:$8 sps:$4 sm:$0xff]  }
  0xbd   : > { %1247 = vmatprep.subr.bf16.mxu0 %v2990_v21  ;;  %v401_v21 = vld [vmem:[%s3594_s18 + $0x160] sm:$0xff] }
  0xbe   : > { %1139 = vmatpush1.bf16.msra.mxu1 %v3082_v3  ;;  %v450_v3 = vld [vmem:[%s3594_s18 + $0x2e8] sm:$0xff] }
  0xbf   : > { %1140 = vmatprep.subr.bf16.mxu1 %v3083_v5  ;;  %v369_v5 = vld [vmem:[%s3594_s18 + $0x60] sm:$0xff] }
  0xc0   : > { %1248 = vmatpush1.bf16.msra.mxu0 %v2992_v22  ;;  %v408_v22 = vld [vmem:[%s3594_s18 + $0x198] sm:$0xff] }
  0xc1   : > { %1249 = vmatprep.subr.bf16.mxu0 %v2993_v23  ;;  %v416_v23 = vld [vmem:[%s3594_s18 + $0x1d8] sm:$0xff] }
  0xc2   : > { %1141 = vmatpush1.bf16.msra.mxu1 %v3085_v11  ;;  %v3054_v11 = vld [vmem:[#allocation4 + $0x2d4] ss:$8 sps:$4 sm:$0xff]  }
  0xc3   : > { %1142 = vmatprep.subr.bf16.mxu1 %v3086_v12 }
  0xc4   : > { %1250 = vmatpush1.bf16.msra.mxu0 %v2995_v24  ;;  %v423_v24 = vld [vmem:[%s3594_s18 + $0x210] sm:$0xff] }
  0xc5   : > { %1251 = vmatprep.subr.bf16.mxu0 %v2996_v25  ;;  %v3091_v25 = vld [vmem:[#allocation4 + $0x90] ss:$8 sps:$4 sm:$0xff]   ;;  %v486_v32 = vpack.c.bf16 %v423_v24, %v416_v23 }
  0xc6   : > { %1143 = vmatpush1.bf16.msra.mxu1 %v3088_v17  ;;  %v455_v17 = vpack.c.bf16 %v364_v9, %v357_v8  ;;  %v378_v23 = vld [vmem:[%s3594_s18 + $0xa8] sm:$0xff]  ;;  %v428_v9 = vld [vmem:[%s3594_s18 + $0x238] sm:$0xff] }
  0xc7   : > { %1144 = vmatprep.subr.bf16.mxu1 %v3089_v19  ;;  %v3052_v19 = vld [vmem:[#allocation4 + $0x2d0] ss:$8 sps:$4 sm:$0xff]  }
  0xc8   : > { %1252 = vmatpush1.bf16.msra.mxu0 %v2998_v26  ;;  %v358_v26 = vld [vmem:[%s3594_s18 + $0x8] sm:$0xff] }
  0xc9   : > { %1253 = vmatprep.subr.bf16.mxu0 %v2999_v27  ;;  %v365_v27 = vld [vmem:[%s3594_s18 + $0x40] sm:$0xff]  ;;  %v3113_v24 = vld [vmem:[#allocation6 + $0x8] sm:$0xff]  }
  0xca   : > { %v456_v29 = vpack.c.bf16 %v365_v27, %v358_v26  ;;  %1145 = vmatpush1.bf16.msra.mxu1 %v3091_v25  ;;  %v386_v25 = vld [vmem:[%s3594_s18 + $0xe8] sm:$0xff]  ;;  %v393_v26 = vld [vmem:[%s3594_s18 + $0x120] sm:$0xff] }
  0xcb   : > { %v3114_v27 = vld [vmem:[#allocation6 + $0x50] sm:$0xff]  }
  0xcc   : > { %1254 = vmatpush1.bf16.msra.mxu0 %v3001_v28  ;;  %v3092_v28 = vld [vmem:[#allocation4 + $0xa4] ss:$8 sps:$4 sm:$0xff]   ;;  %1158 = vmatprep.mubr.bf16.mxu1 %v456_v29  ;;  %v3066_v29 = vld [vmem:[#allocation4 + $0x2f4] ss:$8 sps:$4 sm:$0xff]  }
  0xcd   : > { %1255 = vmatprep.subr.bf16.mxu0 %v3002_v30  ;;  %v478_v30 = vpack.c.bf16 %v408_v22, %v401_v21  ;;  %1146 = vmatprep.subr.bf16.mxu1 %v3092_v28  ;;  %v3060_v21 = vld [vmem:[#allocation4 + $0x2e4] ss:$8 sps:$4 sm:$0xff]   ;;  %v3058_v28 = vld [vmem:[#allocation4 + $0x2e0] ss:$8 sps:$4 sm:$0xff]  }
  0xce   : > { %v371_v22 = vld [vmem:[%s3594_s18 + $0x70] sm:$0xff] }
  0xd0   : > { %1256 = vmatpush1.bf16.msra.mxu0 %v3004_v33  ;;  %v3034_v33 = vld [vmem:[#allocation4 + $0x274] ss:$8 sps:$4 sm:$0xff]  }
  0xd1   : > { %1257 = vmatprep.subr.bf16.mxu0 %v3005_v34  ;;  %v3094_v34 = vld [vmem:[#allocation4 + $0xa0] ss:$8 sps:$4 sm:$0xff]  }
  0xd2   : > { %1147 = vmatpush1.bf16.msra.mxu1 %v3094_v34  ;;  %v3064_v34 = vld [vmem:[#allocation4 + $0x2f0] ss:$8 sps:$4 sm:$0xff]  }
  0xd3   : > { %1148 = vmatprep.subr.bf16.mxu1 %v3095_v35  ;;  %v361_v35 = vld [vmem:[%s3594_s18 + $0x20] sm:$0xff] }
  0xd4   : > { %1258 = vmatpush1.bf16.msra.mxu0 %v3007_v37  ;;  %v3037_v37 = vld [vmem:[#allocation4 + $0x284] ss:$8 sps:$4 sm:$0xff]  }
  0xd5   : > { %1259 = vmatprep.subr.bf16.mxu0 %v3008_v39  ;;  %v422_v39 = vld [vmem:[%s3594_s18 + $0x208] sm:$0xff] }
  0xd6   : > { %v485_v44 = vpack.c.bf16 %v422_v39, %v415_v38  ;;  %1149 = vmatpush1.bf16.msra.mxu1 %v3097_v42  ;;  %v376_v38 = vld [vmem:[%s3594_s18 + $0x98] sm:$0xff]  ;;  %v383_v39 = vld [vmem:[%s3594_s18 + $0xd0] sm:$0xff] }
  0xd7   : > { %v3117_v42 = vld [vmem:[#allocation6 + $0x18] sm:$0xff]  }
  0xd8   : > { %1260 = vmatpush1.bf16.msra.mxu0 %v3010_v40  ;;  %v430_v40 = vld [vmem:[%s3594_s18 + $0x248] sm:$0xff] }
  0xd9   : > { %1332 = vmatprep.subr.bf16.mxu0 %v3013_v43  ;;  %v3098_v43 = vld [vmem:[#allocation4 + $0xc4] ss:$8 sps:$4 sm:$0xff]   ;;  %v493_v47 = vpack.c.bf16 %v437_v41, %v430_v40 }
  0xda   : > { %1150 = vmatprep.subr.bf16.mxu1 %v3098_v43  ;;  %v385_v40 = vld [vmem:[%s3594_s18 + $0xe0] sm:$0xff]  ;;  %v392_v41 = vld [vmem:[%s3594_s18 + $0x118] sm:$0xff] }
  0xdb   : > { %1262 = vmatmul.mubr.bf16.vlgmr.msra.gmra.mrb[0].mxu0 %v457_v49  ;;  %v3038_v49 = vld [vmem:[#allocation4 + $0x290] ss:$8 sps:$4 sm:$0xff]   ;;  %1151 = vmatpush1.bf16.msra.mxu1 %v3100_v48  ;;  %v467_v48 = vpack.c.bf16 %v383_v39, %v376_v38 }
  0xdc   : > { %1333 = vmatpush1.bf16.msra.mxu0 %v3011_v50  ;;  %1271 = vmatprep.mubr.bf16.mxu0 %v465_v52  ;;  %v429_v50 = vld [vmem:[%s3594_s18 + $0x240] sm:$0xff] }
  0xdd   : > { %1334 = vmatprep.subr.bf16.mxu0 %v3016_v51  ;;  %v436_v51 = vld [vmem:[%s3594_s18 + $0x278] sm:$0xff]  ;;  %v453_v38 = vld [vmem:[%s3594_s18 + $0x300] sm:$0xff] }
  0xde   : > { %v3101_v52 = vld [vmem:[#allocation4 + $0xd4] ss:$8 sps:$4 sm:$0xff]   ;;  %v492_v60 = vpack.c.bf16 %v436_v51, %v429_v50 }
  0xdf   : > { %1152 = vmatprep.subr.bf16.mxu1 %v3101_v52  ;;  %v3119_v51 = vld [vmem:[#allocation6 + $0x20] sm:$0xff]   ;;  %v3120_v52 = vld [vmem:[#allocation6 + $0x68] sm:$0xff]  }
  0xe0   : > { %1335 = vmatpush1.bf16.msra.mxu0 %v3014_v54  ;;  %v444_v54 = vld [vmem:[%s3594_s18 + $0x2b8] sm:$0xff] }
  0xe1   : > { %1336 = vmatprep.subr.bf16.mxu0 %v3019_v56  ;;  %v3103_v56 = vld [vmem:[#allocation4 + $0xd0] ss:$8 sps:$4 sm:$0xff]   ;;  %v500_v62 = vpack.c.bf16 %v451_v55, %v444_v54 }
  0xe2   : > { %1153 = vmatpush1.bf16.msra.mxu1 %v3103_v56  ;;  %v382_v54 = vld [vmem:[%s3594_s18 + $0xc8] sm:$0xff]  ;;  %v397_v56 = vld [vmem:[%s3594_s18 + $0x140] sm:$0xff] }
  0xe3   : > { %1272 = vmatmul.mubr.bf16.gmra.mrb[4].mxu0 %v464_v63  ;;  %v3107_v63 = vld [vmem:[#allocation4 + $0xf4] ss:$8 sps:$4 sm:$0xff]   ;;  %1154 = vmatprep.subr.bf16.mxu1 %v3104_v57 }
  0xe4   : > { %1337 = vmatpush1.bf16.msra.mxu0 %v3017_v0  ;;  %1281 = vmatprep.mubr.bf16.mxu0 %v472_v2  ;;  %v3044_v0 = vld [vmem:[#allocation4 + $0x2b0] ss:$8 sps:$4 sm:$0xff]  }
  0xe5   : > { %1338 = vmatprep.subr.bf16.mxu0 %v3022_v1  ;;  %v3049_v1 = vld [vmem:[#allocation4 + $0x2c4] ss:$8 sps:$4 sm:$0xff]  }
  0xe6   : > { %v443_v2 = vld [vmem:[%s3594_s18 + $0x2b0] sm:$0xff]  ;;  %1155 = vmatpush1.bf16.msra.mxu1 %v3106_v61  ;;  %v390_v55 = vld [vmem:[%s3594_s18 + $0x108] sm:$0xff] }
  0xe7   : > { %1156 = vmatprep.subr.bf16.mxu1 %v3107_v63  ;;  %v499_v12 = vpack.c.bf16 %v450_v3, %v443_v2  ;;  %v399_v57 = vld [vmem:[%s3594_s18 + $0x150] sm:$0xff]  ;;  %v414_v61 = vld [vmem:[%s3594_s18 + $0x1c8] sm:$0xff]  ;;  %v474_v63 = vpack.c.bf16 %v397_v56, %v390_v55  ;;  %v389_v2 = vld [vmem:[%s3594_s18 + $0x100] sm:$0xff] }
  0xe8   : > { %1339 = vmatpush1.bf16.msra.mxu0 %v3020_v4  ;;  %v362_v4 = vld [vmem:[%s3594_s18 + $0x28] sm:$0xff]  ;;  %v396_v3 = vld [vmem:[%s3594_s18 + $0x138] sm:$0xff]  ;;  %v3123_v55 = vld [vmem:[#allocation6 + $0x30] sm:$0xff]  }
  0xe9   : > { %1340 = vmatprep.subr.bf16.mxu0 %v3025_v6  ;;  %v3109_v6 = vld [vmem:[#allocation4 + $0xf0] ss:$8 sps:$4 sm:$0xff]   ;;  %v473_v8 = vpack.c.bf16 %v396_v3, %v389_v2 }
  0xea   : > { %1157 = vmatpush1.bf16.msra.mxu1 %v3109_v6  ;;  %v413_v6 = vld [vmem:[%s3594_s18 + $0x1c0] sm:$0xff]  ;;  %v454_v2 = vld [vmem:[%s3594_s18 + $0x308] sm:$0xff] }
  0xeb   : > { %1282 = vmatmul.mubr.bf16.gmra.mrb[8].mxu0 %v471_v13  ;;  %v372_v13 = vld [vmem:[%s3594_s18 + $0x78] sm:$0xff]  ;;  %2591 = vmatprep.subr.bf16.mxu1 %v3110_v10  ;;  %v435_v10 = vld [vmem:[%s3594_s18 + $0x270] sm:$0xff]  ;;  %v405_v56 = vld [vmem:[%s3594_s18 + $0x180] sm:$0xff] }
  0xec   : > { %1341 = vmatpush1.bf16.msra.mxu0 %v3023_v14  ;;  %1291 = vmatprep.mubr.bf16.mxu0 %v479_v16  ;;  %v379_v14 = vld [vmem:[%s3594_s18 + $0xb0] sm:$0xff] }
  0xed   : > { %1342 = vmatprep.subr.bf16.mxu0 %v3028_v15  ;;  %v460_v15 = vpack.c.bf16 %v369_v5, %v362_v4  ;;  %v3111_v16 = vld [vmem:[#allocation6] sm:$0xff]   ;;  %1159 = vmatmul.mubr.bf16.vlgmr.msra.gmra.mrb[0].mxu1 %v455_v17  ;;  %v404_v4 = vld [vmem:[%s3594_s18 + $0x178] sm:$0xff] }
  0xee   : > { %2592 = vmatpush3.bf16.msra.mxu1 %v3111_v16  ;;  %v411_v5 = vld [vmem:[%s3594_s18 + $0x1b0] sm:$0xff]  ;;  %v418_v16 = vld [vmem:[%s3594_s18 + $0x1e8] sm:$0xff]  ;;  %v425_v17 = vld [vmem:[%s3594_s18 + $0x220] sm:$0xff] }
  0xf0   : > { %1343 = vmatpush1.bf16.msra.mxu0 %v3026_v18  ;;  %v3112_v18 = vld [vmem:[#allocation6 + $0x48] sm:$0xff]  }
  0xf1   : > { %1344 = vmatprep.subr.bf16.mxu0 %v3031_v20  ;;  %v463_v20 = vpack.c.bf16 %v379_v14, %v372_v13  ;;  %2593 = vmatprep.subr.bf16.mxu1 %v3112_v18  ;;  %v491_v13 = vpack.c.bf16 %v435_v10, %v428_v9  ;;  %v403_v14 = vld [vmem:[%s3594_s18 + $0x170] sm:$0xff]  ;;  %v3369_v9 = vmov 0.0  }
  0xf2   : > { %2594 = vmatpush3.bf16.msra.mxu1 %v3113_v24  ;;  %v427_v18 = vld [vmem:[%s3594_s18 + $0x230] sm:$0xff] }
  0xf3   : > { %1292 = vmatmul.mubr.bf16.gmra.mrb[12].mxu0 %v478_v30  ;;  %1168 = vmatprep.mubr.bf16.mxu1 %v463_v20  ;;  %v462_v30 = vpack.c.bf16 %v378_v23, %v371_v22  ;;  %v449_v22 = vld [vmem:[%s3594_s18 + $0x2e0] sm:$0xff]  ;;  %v488_v23 = vpack.c.bf16 %v425_v17, %v418_v16 }
  0xf4   : > { %1345 = vmatpush1.bf16.msra.mxu0 %v3029_v31  ;;  %1301 = vmatprep.mubr.bf16.mxu0 %v486_v32  ;;  %v470_v31 = vpack.c.bf16 %v393_v26, %v386_v25  ;;  %v3115_v32 = vld [vmem:[#allocation6 + $0x10] sm:$0xff]  }
  0xf5   : > { %1346 = vmatprep.subr.bf16.mxu0 %v3034_v33  ;;  %2595 = vmatprep.subr.bf16.mxu1 %v3114_v27  ;;  %v3116_v33 = vld [vmem:[#allocation6 + $0x58] sm:$0xff]   ;;  %v417_v26 = vld [vmem:[%s3594_s18 + $0x1e0] sm:$0xff] }
  0xf6   : > { %1169 = vmatmul.mubr.bf16.gmra.mrb[4].mxu1 %v462_v30  ;;  %v424_v27 = vld [vmem:[%s3594_s18 + $0x218] sm:$0xff]  ;;  %v441_v30 = vld [vmem:[%s3594_s18 + $0x2a0] sm:$0xff] }
  0xf7   : > { %1178 = vmatprep.mubr.bf16.mxu1 %v470_v31  ;;  %2596 = vmatpush3.bf16.msra.mxu1 %v3115_v32  ;;  %v448_v31 = vld [vmem:[%s3594_s18 + $0x2d8] sm:$0xff]  ;;  %v487_v32 = vpack.c.bf16 %v424_v27, %v417_v26 }
  0xf8   : > { %1347 = vmatpush1.bf16.msra.mxu0 %v3032_v36  ;;  %v368_v36 = vld [vmem:[%s3594_s18 + $0x58] sm:$0xff]  ;;  %2597 = vmatprep.subr.bf16.mxu1 %v3116_v33 }
  0xf9   : > { %1348 = vmatprep.subr.bf16.mxu0 %v3037_v37  ;;  %v3072_v37 = vld [vmem:[#allocation4 + $0x304] ss:$8 sps:$4 sm:$0xff]   ;;  %v459_v43 = vpack.c.bf16 %v368_v36, %v361_v35 }
  0xfa   : > { %v431_v35 = vld [vmem:[%s3594_s18 + $0x250] sm:$0xff]  ;;  %v438_v36 = vld [vmem:[%s3594_s18 + $0x288] sm:$0xff] }
  0xfb   : > { %1302 = vmatmul.mubr.bf16.gmra.mrb[16].mxu0 %v485_v44  ;;  %v400_v44 = vld [vmem:[%s3594_s18 + $0x158] sm:$0xff]  ;;  %2598 = vmatpush3.bf16.msra.mxu1 %v3117_v42  ;;  %v494_v39 = vpack.c.bf16 %v438_v36, %v431_v35 }
  0xfc   : > { %1349 = vmatpush1.bf16.msra.mxu0 %v3035_v45  ;;  %1311 = vmatprep.mubr.bf16.mxu0 %v493_v47  ;;  %v407_v45 = vld [vmem:[%s3594_s18 + $0x190] sm:$0xff]  ;;  %v452_v42 = vld [vmem:[%s3594_s18 + $0x2f8] sm:$0xff] }
  0xfd   : > { %1350 = vmatprep.subr.bf16.mxu0 %v3040_v46  ;;  %v3118_v46 = vld [vmem:[#allocation6 + $0x60] sm:$0xff]   ;;  %v3070_v47 = vld [vmem:[#allocation4 + $0x300] ss:$8 sps:$4 sm:$0xff]   ;;  %v477_v50 = vpack.c.bf16 %v407_v45, %v400_v44  ;;  %v3368_v44 = vmov 0  }
  0xfe   : > { %2599 = vmatprep.subr.bf16.mxu1 %v3118_v46  ;;  %v363_v45 = vld [vmem:[%s3594_s18 + $0x30] sm:$0xff]  ;;  %v370_v46 = vld [vmem:[%s3594_s18 + $0x68] sm:$0xff] }
  0xff   : > { %2600 = vmatpush3.bf16.msra.mxu1 %v3119_v51  ;;  %v391_v51 = vld [vmem:[%s3594_s18 + $0x110] sm:$0xff] }
 0x100   : > { %1351 = vmatpush1.bf16.msra.mxu0 %v3038_v49  ;;  %v469_v49 = vpack.c.bf16 %v392_v41, %v385_v40  ;;  %2601 = vmatprep.subr.bf16.mxu1 %v3120_v52  ;;  %v445_v41 = vld [vmem:[%s3594_s18 + $0x2c0] sm:$0xff]  ;;  %v398_v52 = vld [vmem:[%s3594_s18 + $0x148] sm:$0xff] }
 0x101   : > { %1352 = vmatprep.subr.bf16.mxu0 %v3043_v53  ;;  %v375_v53 = vld [vmem:[%s3594_s18 + $0x90] sm:$0xff] }
 0x102   : > { %1179 = vmatmul.mubr.bf16.gmra.mrb[8].mxu1 %v469_v49  ;;  %v384_v49 = vld [vmem:[%s3594_s18 + $0xd8] sm:$0xff] }
 0x103   : > { %1312 = vmatmul.mubr.bf16.gmra.mrb[20].mxu0 %v492_v60  ;;  %1188 = vmatprep.mubr.bf16.mxu1 %v477_v50  ;;  %v466_v60 = vpack.c.bf16 %v382_v54, %v375_v53  ;;  %v475_v53 = vpack.c.bf16 %v398_v52, %v391_v51  ;;  %v3122_v54 = vld [vmem:[#allocation6 + $0x70] sm:$0xff]  }
 0x104   : > { %1353 = vmatpush1.bf16.msra.mxu0 %v3041_v58  ;;  %1321 = vmatprep.mubr.bf16.mxu0 %v500_v62  ;;  %v406_v58 = vld [vmem:[%s3594_s18 + $0x188] sm:$0xff]  ;;  %v421_v62 = vld [vmem:[%s3594_s18 + $0x200] sm:$0xff] }
 0x105   : > { %1354 = vmatprep.subr.bf16.mxu0 %v3046_v59  ;;  %v3121_v59 = vld [vmem:[#allocation6 + $0x28] sm:$0xff]  }
 0x106   : > { %2602 = vmatpush3.bf16.msra.mxu1 %v3121_v59  ;;  %v419_v59 = vld [vmem:[%s3594_s18 + $0x1f0] sm:$0xff] }
 0x107   : > { %2603 = vmatprep.subr.bf16.mxu1 %v3122_v54 }
 0x108   : > { %1355 = vmatpush1.bf16.msra.mxu0 %v3044_v0  ;;  %v476_v0 = vpack.c.bf16 %v406_v58, %v399_v57  ;;  %v412_v57 = vld [vmem:[%s3594_s18 + $0x1b8] sm:$0xff] }
 0x109   : > { %1356 = vmatprep.subr.bf16.mxu0 %v3049_v1  ;;  %v484_v1 = vpack.c.bf16 %v421_v62, %v414_v61  ;;  %v482_v58 = vpack.c.bf16 %v412_v57, %v405_v56  ;;  %v433_v62 = vld [vmem:[%s3594_s18 + $0x260] sm:$0xff] }
 0x10a   : > { %1189 = vmatmul.mubr.bf16.gmra.mrb[12].mxu1 %v476_v0 }
 0x10b   : > { %1322 = vmatmul.mubr.bf16.gmra.mrb[24].mxu0 %v499_v12  ;;  %1198 = vmatprep.mubr.bf16.mxu1 %v484_v1  ;;  %v447_v1 = vld [vmem:[%s3594_s18 + $0x2d0] sm:$0xff] }
 0x10c   : > { %1357 = vmatpush1.bf16.msra.mxu0 %v3047_v7  ;;  %1364 = vmatprep.mubr.bf16.mxu0 %v460_v15  ;;  %v420_v7 = vld [vmem:[%s3594_s18 + $0x1f8] sm:$0xff]  ;;  %v410_v15 = vld [vmem:[%s3594_s18 + $0x1a8] sm:$0xff]  ;;  %v503_v3 = vpack.c.bf16 %v454_v2, %v447_v1 }
 0x10d   : > { %1358 = vmatprep.subr.bf16.mxu0 %v3054_v11  ;;  %v481_v11 = vpack.c.bf16 %v411_v5, %v404_v4  ;;  %v483_v12 = vpack.c.bf16 %v420_v7, %v413_v6  ;;  %v480_v20 = vpack.c.bf16 %v410_v15, %v403_v14  ;;  %2604 = vmatpush3.bf16.msra.mxu1 %v3123_v55  ;;  %v3124_v4 = vld [vmem:[#allocation6 + $0x78] sm:$0xff]  }
 0x10e   : > { %v3125_v5 = vld [vmem:[#allocation6 + $0x38] sm:$0xff]   ;;  %2605 = vmatprep.subr.bf16.mxu1 %v3124_v4 }
 0x110   : > { %1359 = vmatpush1.bf16.msra.mxu0 %v3052_v19  ;;  %v434_v19 = vld [vmem:[%s3594_s18 + $0x268] sm:$0xff] }
 0x111   : > { %1360 = vmatprep.subr.bf16.mxu0 %v3060_v21  ;;  %v442_v21 = vld [vmem:[%s3594_s18 + $0x2a8] sm:$0xff]  ;;  %v490_v24 = vpack.c.bf16 %v434_v19, %v427_v18  ;;  %2606 = vmatpush3.bf16.msra.mxu1 %v3125_v5 }
 0x112   : > { %1199 = vmatmul.mubr.bf16.gmra.mrb[16].mxu1 %v483_v12  ;;  %v498_v25 = vpack.c.bf16 %v449_v22, %v442_v21  ;;  %2664 = vmatprep.subr.bf16.mxu1 %v3369_v9 }
 0x113   : > { %1208 = vmatprep.mubr.bf16.mxu1 %v491_v13 }
 0x114   : > { %1361 = vmatpush1.bf16.msra.mxu0 %v3058_v28  ;;  %v432_v28 = vld [vmem:[%s3594_s18 + $0x258] sm:$0xff] }
 0x115   : > { %1362 = vmatprep.subr.bf16.mxu0 %v3066_v29  ;;  %v439_v29 = vld [vmem:[%s3594_s18 + $0x290] sm:$0xff] }
 0x116   : > { %v495_v33 = vpack.c.bf16 %v439_v29, %v432_v28 }
 0x118   : > { %1363 = vmatpush1.bf16.msra.mxu0 %v3064_v34  ;;  %v497_v34 = vpack.c.bf16 %v448_v31, %v441_v30 }
 0x119   : > { %1435 = vmatprep.subr.bf16.mxu0 %v3072_v37  ;;  %v446_v37 = vld [vmem:[%s3594_s18 + $0x2c8] sm:$0xff] }
 0x11a   : > { %1209 = vmatmul.mubr.bf16.gmra.mrb[20].mxu1 %v490_v24  ;;  %v502_v40 = vpack.c.bf16 %v453_v38, %v446_v37  ;;  %v602_v38 = vld [vmem:[%s3945_s2] sm:$0x3] }
 0x11b   : > { %1365 = vmatmul.mubr.bf16.vlgmr.msra.gmra.mrb[0].mxu0 %v459_v43  ;;  %1218 = vmatprep.mubr.bf16.mxu1 %v498_v25  ;;  %v501_v43 = vpack.c.bf16 %v452_v42, %v445_v41 }
 0x11c   : > { %1436 = vmatpush1.bf16.msra.mxu0 %v3070_v47  ;;  %1374 = vmatprep.mubr.bf16.mxu0 %v467_v48  ;;  %v461_v47 = vpack.c.bf16 %v370_v46, %v363_v45  ;;  %v377_v48 = vld [vmem:[%s3594_s18 + $0xa0] sm:$0xff] }
 0x11d   : > { %v468_v50 = vpack.c.bf16 %v384_v49, %v377_v48 }
 0x122   : > { %1219 = vmatmul.mubr.bf16.gmra.mrb[24].mxu1 %v497_v34  ;;  %v604_v34 = vlaneseq }
 0x123   : > { %1375 = vmatmul.mubr.bf16.gmra.mrb[4].mxu0 %v466_v60  ;;  %v426_v60 = vld [vmem:[%s3594_s18 + $0x228] sm:$0xff] }
 0x124   : > { %1384 = vmatprep.mubr.bf16.mxu0 %v474_v63  ;;  %v489_v61 = vpack.c.bf16 %v426_v60, %v419_v59  ;;  %v440_v63 = vld [vmem:[%s3594_s18 + $0x298] sm:$0xff]  ;;  %v605_v36 = vshrl.u32 %v604_v34, 7 }
 0x125   : > { %v496_v0 = vpack.c.bf16 %v440_v63, %v433_v62  ;;  %v3126_v63 = vld [vmem:[#allocation7] sm:$0xff]  }
 0x126   : > { %v606_v37 = vsub.s32 0, %v605_v36 }
 0x12b   : > { %1385 = vmatmul.mubr.bf16.gmra.mrb[8].mxu0 %v473_v8 }
 0x12c   : > { %1394 = vmatprep.mubr.bf16.mxu0 %v481_v11 }
 0x133   : > { %1395 = vmatmul.mubr.bf16.gmra.mrb[12].mxu0 %v480_v20 }
 0x134   : > { %1404 = vmatprep.mubr.bf16.mxu0 %v488_v23 }
 0x13b   : > { %1405 = vmatmul.mubr.bf16.gmra.mrb[16].mxu0 %v487_v32 }
 0x13c   : > { %1414 = vmatprep.mubr.bf16.mxu0 %v495_v33 }
 0x143   : > { %1415 = vmatmul.mubr.bf16.gmra.mrb[20].mxu0 %v494_v39  ;;  %v610_v39 = vsub.s32 1, %v605_v36 }
 0x144   : > { %1424 = vmatprep.mubr.bf16.mxu0 %v502_v40  ;;  %v3757_v40 = vrot.slane %v602_v38, %v606_v37 }
 0x145   : > { %v3759_v41 = vrot.slane %v602_v38, %v610_v39 }
 0x14b   : > { %1425 = vmatmul.mubr.bf16.gmra.mrb[24].mxu0 %v501_v43 }
 0x14c   : > { %1467 = vmatprep.mubr.bf16.mxu0 %v3368_v44 }
 0x153   : > { %2476 = vmatmul.mubr.msk.bf16.vlgmr.msra.gmra.mrb[0].mxu0 %vm1104_vm0, %v461_v47 }
 0x154   : > { %1477 = vmatprep.mubr.bf16.mxu0 %v3368_v44 }
 0x15b   : > { %2477 = vmatmul.mubr.msk.bf16.gmra.mrb[4].mxu0 %vm1104_vm0, %v468_v50 }
 0x15c   : > { %1487 = vmatprep.mubr.bf16.mxu0 %v3368_v44 }
 0x163   : > { %2478 = vmatmul.mubr.msk.bf16.gmra.mrb[8].mxu0 %vm1104_vm0, %v475_v53 }
 0x164   : > { %1497 = vmatprep.mubr.bf16.mxu0 %v3368_v44 }
 0x16b   : > { %2479 = vmatmul.mubr.msk.bf16.gmra.mrb[12].mxu0 %vm1104_vm0, %v482_v58 }
 0x16c   : > { %1507 = vmatprep.mubr.bf16.mxu0 %v3368_v44 }
 0x173   : > { %2480 = vmatmul.mubr.msk.bf16.gmra.mrb[16].mxu0 %vm1104_vm0, %v489_v61 }
 0x174   : > { %1517 = vmatprep.mubr.bf16.mxu0 %v3368_v44 }
 0x17b   : > { %2481 = vmatmul.mubr.msk.bf16.gmra.mrb[20].mxu0 %vm1104_vm0, %v496_v0 }
 0x17c   : > { %1527 = vmatprep.mubr.bf16.mxu0 %v3368_v44 }
 0x183   : > { %2482 = vmatmul.mubr.msk.bf16.gmra.mrb[24].mxu0 %vm1104_vm0, %v503_v3 }
 0x1c0   : > { %v1160_v6 = vpop.f32.mrb[0].mxu1 }
 0x1c1   : > { %v1162_v7 = vpop.f32.mrb[1].mxu1  ;;  %v1161_v42 = vadd.f32 %v1160_v6, %v3757_v40 }
 0x1c2   : > { %v1164_v8 = vpop.f32.mrb[2].mxu1  ;;  %v1163_v43 = vadd.f32 %v1162_v7, %v3759_v41 }
 0x1c3   : > { %v1166_v10 = vpop.f32.mrb[3].mxu1  ;;  %v1165_v45 = vadd.f32 %v1164_v8, %v3757_v40 }
 0x1c4   : > { %v1167_v48 = vadd.f32 %v1166_v10, %v3759_v41  ;;  %v3127_v10 = vld [vmem:[#allocation7 + $0x8] sm:$0xff]  }
 0x1c9   : > { %v1170_v11 = vpop.f32.mrb[4].mxu1 }
 0x1ca   : > { %v1172_v12 = vpop.f32.mrb[5].mxu1  ;;  %v1171_v56 = vadd.f32 %v1170_v11, %v3757_v40 }
 0x1cb   : > { %v1174_v13 = vpop.f32.mrb[6].mxu1  ;;  %v1173_v59 = vadd.f32 %v1172_v12, %v3759_v41 }
 0x1cc   : > { %v1176_v14 = vpop.f32.mrb[7].mxu1  ;;  %v1175_v0 = vadd.f32 %v1174_v13, %v3757_v40 }
 0x1cd   : > { %v1177_v3 = vadd.f32 %v1176_v14, %v3759_v41 }
 0x1d5   : > { %v3714_v15 = vpop.f32.mrb[8].mxu1 }
 0x1d6   : > { %v3716_v16 = vpop.f32.mrb[9].mxu1  ;;  %v1181_v34 = vadd.f32 %v3714_v15, %v3757_v40 }
 0x1d7   : > { %v3718_v17 = vpop.f32.mrb[10].mxu1  ;;  %v1183_v14 = vadd.f32 %v3716_v16, %v3759_v41 }
 0x1d8   : > { %v3720_v18 = vpop.f32.mrb[11].mxu1 }
 0x1d9   : > { %v1187_v15 = vadd.f32 %v3720_v18, %v3759_v41 }
 0x1dd   : > { %v3722_v19 = vpop.f32.mrb[12].mxu1 }
 0x1de   : > { %v3724_v20 = vpop.f32.mrb[13].mxu1 }
 0x1df   : > { %v3726_v21 = vpop.f32.mrb[14].mxu1  ;;  %v1193_v18 = vadd.f32 %v3724_v20, %v3759_v41 }
 0x1e0   : > { %v3728_v22 = vpop.f32.mrb[15].mxu1 }
 0x1e5   : > { %v3730_v23 = vpop.f32.mrb[16].mxu1 }
 0x1e6   : > { %v3732_v24 = vpop.f32.mrb[17].mxu1 }
 0x1e7   : > { %v3734_v25 = vpop.f32.mrb[18].mxu1 }
 0x1e8   : > { %v3736_v26 = vpop.f32.mrb[19].mxu1 }
 0x1ed   : > { %v3738_v27 = vpop.f32.mrb[20].mxu1 }
 0x1ee   : > { %v3740_v28 = vpop.f32.mrb[21].mxu1 }
 0x1ef   : > { %v3742_v29 = vpop.f32.mrb[22].mxu1 }
 0x1f0   : > { %v3744_v30 = vpop.f32.mrb[23].mxu1 }
 0x1f5   : > { %v3746_v31 = vpop.f32.mrb[24].mxu1 }
 0x1f6   : > { %v3748_v32 = vpop.f32.mrb[25].mxu1 }
 0x1f7   : > { %v3750_v33 = vpop.f32.mrb[26].mxu1 }
 0x1f8   : > { %v3752_v35 = vpop.f32.mrb[27].mxu1 }
 0x226   : > { %v1469_v44 = vpop.f32.mrb[0].mxu0 }
 0x227   : > { %v2709_v46 = vadd.f32 %v1469_v44, %v1161_v42  ;;  %v1471_v47 = vpop.f32.mrb[1].mxu0  ;;  %v3128_v42 = vld [vmem:[#allocation7 + $0x10] sm:$0xff]  }
 0x228   : > { %v2711_v49 = vadd.f32 %v1471_v47, %v1163_v43  ;;  %v1473_v50 = vpop.f32.mrb[2].mxu0  ;;  %v1185_v43 = vadd.f32 %v3718_v17, %v3757_v40  ;;  %v1191_v17 = vadd.f32 %v3722_v19, %v3757_v40  ;;  %v1197_v19 = vadd.f32 %v3728_v22, %v3759_v41 }
 0x229   : > { %v2713_v51 = vadd.f32 %v1473_v50, %v1165_v45  ;;  %v1475_v52 = vpop.f32.mrb[3].mxu0  ;;  %v1538_v54 = vmax.f32 %v2709_v46, 0.0  ;;  %v3129_v50 = vld [vmem:[#allocation7 + $0x18] sm:$0xff]   ;;  %v1203_v22 = vadd.f32 %v3732_v24, %v3759_v41 }
 0x22a   : > { %v2715_v53 = vadd.f32 %v1475_v52, %v1167_v48  ;;  %v1539_v57 = vmax.f32 %v2711_v49, 0.0 }
 0x22b   : > { %v1540_v55 = vmax.f32 %v2713_v51, 0.0 }
 0x22c   : > { %v1541_v58 = vmax.f32 %v2715_v53, 0.0 }
 0x22d   : > { %v1566_v60 = vpack.c.bf16 %v1540_v55, %v1538_v54 }
 0x22e   : > { %v1567_v61 = vpack.c.bf16 %v1541_v58, %v1539_v57  ;;  %v1479_v62 = vpop.f32.mrb[4].mxu0  ;;  %v3130_v58 = vld [vmem:[#allocation7 + $0x20] sm:$0xff]  }
 0x22f   : > { %v2717_v1 = vadd.f32 %v1479_v62, %v1171_v56  ;;  %v1481_v2 = vpop.f32.mrb[5].mxu0 }
 0x230   : > { %v2719_v4 = vadd.f32 %v1481_v2, %v1173_v59  ;;  %v1483_v5 = vpop.f32.mrb[6].mxu0  ;;  %1747 = vmatprep.mubr.bf16.mxu1 %v1567_v61  ;;  %v1195_v59 = vadd.f32 %v3726_v21, %v3757_v40  ;;  %v3131_v2 = vld [vmem:[#allocation7 + $0x28] sm:$0xff]   ;;  %v1201_v21 = vadd.f32 %v3730_v23, %v3757_v40  ;;  %v1207_v23 = vadd.f32 %v3736_v26, %v3759_v41 }
 0x231   : > { %v2721_v6 = vadd.f32 %v1483_v5, %v1175_v0  ;;  %v1485_v7 = vpop.f32.mrb[7].mxu0  ;;  %1748 = vmatmul.mubr.bf16.vlgmr.msra.gmra.mrb[28].mxu1 %v1566_v60  ;;  %v1542_v11 = vmax.f32 %v2717_v1, 0.0  ;;  %v1213_v26 = vadd.f32 %v3740_v28, %v3759_v41 }
 0x232   : > { %v2723_v8 = vadd.f32 %v1485_v7, %v1177_v3  ;;  %2665 = vmatpush3.bf16.msra.mxu1 %v3126_v63  ;;  %v1543_v13 = vmax.f32 %v2719_v4, 0.0 }
 0x233   : > { %v1544_v12 = vmax.f32 %v2721_v6, 0.0  ;;  %2666 = vmatprep.subr.bf16.mxu1 %v3369_v9 }
 0x234   : > { %v1545_v36 = vmax.f32 %v2723_v8, 0.0 }
 0x235   : > { %v1568_v37 = vpack.c.bf16 %v1544_v12, %v1542_v11  ;;  %v3132_v11 = vld [vmem:[#allocation7 + $0x30] sm:$0xff]   ;;  %v1205_v12 = vadd.f32 %v3734_v25, %v3757_v40  ;;  %v1211_v25 = vadd.f32 %v3738_v27, %v3757_v40 }
 0x236   : > { %v1569_v38 = vpack.c.bf16 %v1545_v36, %v1543_v13  ;;  %v1489_v39 = vpop.f32.mrb[8].mxu0  ;;  %2667 = vmatpush3.bf16.msra.mxu1 %v3127_v10 }
 0x237   : > { %v2725_v44 = vadd.f32 %v1489_v39, %v1181_v34  ;;  %v1491_v45 = vpop.f32.mrb[9].mxu0  ;;  %2668 = vmatprep.subr.bf16.mxu1 %v3369_v9 }
 0x238   : > { %v2727_v46 = vadd.f32 %v1491_v45, %v1183_v14  ;;  %v1493_v47 = vpop.f32.mrb[10].mxu0  ;;  %1755 = vmatprep.mubr.bf16.mxu1 %v1569_v38 }
 0x239   : > { %v2729_v48 = vadd.f32 %v1493_v47, %v1185_v43  ;;  %v1495_v16 = vpop.f32.mrb[11].mxu0  ;;  %1756 = vmatmul.mubr.bf16.gmra.mrb[32].mxu1 %v1568_v37  ;;  %v1546_v51 = vmax.f32 %v2725_v44, 0.0  ;;  %v1215_v47 = vadd.f32 %v3742_v29, %v3757_v40  ;;  %v1223_v29 = vadd.f32 %v3748_v32, %v3759_v41 }
 0x23a   : > { %v2731_v49 = vadd.f32 %v1495_v16, %v1187_v15  ;;  %2669 = vmatpush3.bf16.msra.mxu1 %v3128_v42  ;;  %v1547_v53 = vmax.f32 %v2727_v46, 0.0 }
 0x23b   : > { %v1548_v52 = vmax.f32 %v2729_v48, 0.0  ;;  %2670 = vmatprep.subr.bf16.mxu1 %v3369_v9 }
 0x23c   : > { %v1549_v54 = vmax.f32 %v2731_v49, 0.0  ;;  %v1217_v49 = vadd.f32 %v3744_v30, %v3759_v41 }
 0x23d   : > { %v1570_v55 = vpack.c.bf16 %v1548_v52, %v1546_v51 }
 0x23e   : > { %v1571_v56 = vpack.c.bf16 %v1549_v54, %v1547_v53  ;;  %v1499_v57 = vpop.f32.mrb[12].mxu0  ;;  %2671 = vmatpush3.bf16.msra.mxu1 %v3129_v50  ;;  %v1221_v54 = vadd.f32 %v3746_v31, %v3757_v40 }
 0x23f   : > { %v2733_v60 = vadd.f32 %v1499_v57, %v1191_v17  ;;  %v1501_v61 = vpop.f32.mrb[13].mxu0  ;;  %2672 = vmatprep.subr.bf16.mxu1 %v3369_v9 }
 0x240   : > { %v2735_v62 = vadd.f32 %v1501_v61, %v1193_v18  ;;  %v1503_v63 = vpop.f32.mrb[14].mxu0  ;;  %1763 = vmatprep.mubr.bf16.mxu1 %v1571_v56  ;;  %v1227_v61 = vadd.f32 %v3752_v35, %v3759_v41 }
 0x241   : > { %v2737_v0 = vadd.f32 %v1503_v63, %v1195_v59  ;;  %v1505_v20 = vpop.f32.mrb[15].mxu0  ;;  %1764 = vmatmul.mubr.bf16.gmra.mrb[36].mxu1 %v1570_v55  ;;  %v1550_v3 = vmax.f32 %v2733_v60, 0.0 }
 0x242   : > { %v2739_v1 = vadd.f32 %v1505_v20, %v1197_v19  ;;  %2673 = vmatpush3.bf16.msra.mxu1 %v3130_v58  ;;  %v1551_v5 = vmax.f32 %v2735_v62, 0.0  ;;  %v1225_v58 = vadd.f32 %v3750_v33, %v3757_v40  ;;  %v3133_v33 = vld [vmem:[#allocation7 + $0x38] sm:$0xff]   ;;  %v3821_v40 = vld [vmem:[%s3947_s4] ss:$0 sm:$0xff] }
 0x243   : > { %v1552_v4 = vmax.f32 %v2737_v0, 0.0  ;;  %2674 = vmatprep.subr.bf16.mxu1 %v3369_v9 }
 0x244   : > { %v1553_v6 = vmax.f32 %v2739_v1, 0.0 }
 0x245   : > { %v1572_v7 = vpack.c.bf16 %v1552_v4, %v1550_v3 }
 0x246   : > { %v1573_v8 = vpack.c.bf16 %v1553_v6, %v1551_v5  ;;  %v1509_v10 = vpop.f32.mrb[16].mxu0  ;;  %2675 = vmatpush3.bf16.msra.mxu1 %v3131_v2 }
 0x247   : > { %v2741_v34 = vadd.f32 %v1509_v10, %v1201_v21  ;;  %v1511_v13 = vpop.f32.mrb[17].mxu0  ;;  %2676 = vmatprep.subr.bf16.mxu1 %v3369_v9 }
 0x248   : > { %v2743_v36 = vadd.f32 %v1511_v13, %v1203_v22  ;;  %v1513_v14 = vpop.f32.mrb[18].mxu0  ;;  %1771 = vmatprep.mubr.bf16.mxu1 %v1573_v8 }
 0x249   : > { %v2745_v37 = vadd.f32 %v1513_v14, %v1205_v12  ;;  %v1515_v24 = vpop.f32.mrb[19].mxu0  ;;  %1772 = vmatmul.mubr.bf16.gmra.mrb[40].mxu1 %v1572_v7  ;;  %v1554_v39 = vmax.f32 %v2741_v34, 0.0 }
 0x24a   : > { %v2747_v38 = vadd.f32 %v1515_v24, %v1207_v23  ;;  %2677 = vmatpush3.bf16.msra.mxu1 %v3132_v11  ;;  %v1555_v43 = vmax.f32 %v2743_v36, 0.0 }
 0x24b   : > { %v1556_v42 = vmax.f32 %v2745_v37, 0.0  ;;  %2678 = vmatprep.subr.bf16.mxu1 %v3369_v9 }
 0x24c   : > { %v1557_v44 = vmax.f32 %v2747_v38, 0.0 }
 0x24d   : > { %v1574_v45 = vpack.c.bf16 %v1556_v42, %v1554_v39 }
 0x24e   : > { %v1575_v15 = vpack.c.bf16 %v1557_v44, %v1555_v43  ;;  %v1519_v46 = vpop.f32.mrb[20].mxu0  ;;  %2679 = vmatpush3.bf16.msra.mxu1 %v3133_v33 }
 0x24f   : > { %v2749_v48 = vadd.f32 %v1519_v46, %v1211_v25  ;;  %v1521_v16 = vpop.f32.mrb[21].mxu0 }
 0x250   : > { %v2751_v50 = vadd.f32 %v1521_v16, %v1213_v26  ;;  %v1523_v27 = vpop.f32.mrb[22].mxu0  ;;  %1779 = vmatprep.mubr.bf16.mxu1 %v1575_v15 }
 0x251   : > { %v2753_v51 = vadd.f32 %v1523_v27, %v1215_v47  ;;  %v1525_v52 = vpop.f32.mrb[23].mxu0  ;;  %1780 = vmatmul.mubr.bf16.gmra.mrb[44].mxu1 %v1574_v45  ;;  %v1558_v53 = vmax.f32 %v2749_v48, 0.0 }
 0x252   : > { %v2755_v17 = vadd.f32 %v1525_v52, %v1217_v49  ;;  %v1559_v18 = vmax.f32 %v2751_v50, 0.0 }
 0x253   : > { %v1560_v28 = vmax.f32 %v2753_v51, 0.0 }
 0x254   : > { %v1561_v55 = vmax.f32 %v2755_v17, 0.0 }
 0x255   : > { %v1576_v56 = vpack.c.bf16 %v1560_v28, %v1558_v53 }
 0x256   : > { %v1577_v57 = vpack.c.bf16 %v1561_v55, %v1559_v18  ;;  %v1529_v30 = vpop.f32.mrb[24].mxu0 }
 0x257   : > { %v2757_v59 = vadd.f32 %v1529_v30, %v1221_v54  ;;  %v1531_v60 = vpop.f32.mrb[25].mxu0 }
 0x258   : > { %v2759_v19 = vadd.f32 %v1531_v60, %v1223_v29  ;;  %v1533_v62 = vpop.f32.mrb[26].mxu0  ;;  %1787 = vmatprep.mubr.bf16.mxu1 %v1577_v57 }
 0x259   : > { %v2761_v31 = vadd.f32 %v1533_v62, %v1225_v58  ;;  %v1535_v63 = vpop.f32.mrb[27].mxu0  ;;  %1788 = vmatmul.mubr.bf16.gmra.mrb[48].mxu1 %v1576_v56  ;;  %v1562_v20 = vmax.f32 %v2757_v59, 0.0 }
 0x25a   : > { %v2763_v0 = vadd.f32 %v1535_v63, %v1227_v61  ;;  %v1563_v1 = vmax.f32 %v2759_v19, 0.0 }
 0x25b   : > { %v1564_v32 = vmax.f32 %v2761_v31, 0.0 }
 0x25c   : > { %v1565_v2 = vmax.f32 %v2763_v0, 0.0 }
 0x25d   : > { %v1578_v3 = vpack.c.bf16 %v1564_v32, %v1562_v20 }
 0x25e   : > { %v1579_v4 = vpack.c.bf16 %v1565_v2, %v1563_v1 }
 0x260   : > { %1795 = vmatprep.mubr.bf16.mxu1 %v1579_v4 }
 0x261   : > { %1796 = vmatmul.mubr.bf16.gmra.mrb[52].mxu1 %v1578_v3 }
 0x262   : > { %2680 = vmatprep.mubr.msk.bf16.mxu1 %vm3370_vm1, %v3369_v9 }
 0x304   : > { %v2607_v35 = vpop.f32.mrb[28].mxu1 }
 0x305   : > { %v2608_v41 = vpop.f32.mrb[29].mxu1 }
 0x306   : > { %v2609_v21 = vadd.f32 %v2608_v41, %v2607_v35  ;;  %v2610_v5 = vpop.f32.mrb[30].mxu1 }
 0x307   : > { %v2611_v6 = vpop.f32.mrb[31].mxu1 }
 0x308   : > { %v1750_v22 = vadd.f32 %v2609_v21, %v3821_v40  ;;  %v2612_v7 = vadd.f32 %v2611_v6, %v2610_v5 }
 0x30a   : > { %v1753_v8 = vadd.f32 %v2612_v7, %v3821_v40  ;;  %v1804_v10 = vmax.f32 %v1750_v22, 0.0 }
 0x30c   : > { %v1805_v11 = vmax.f32 %v1753_v8, 0.0  ;;  %v2613_v12 = vpop.f32.mrb[32].mxu1 }
 0x30d   : > { %v2614_v34 = vpop.f32.mrb[33].mxu1 }
 0x30e   : > { %v1818_v13 = vpack.c.bf16 %v1805_v11, %v1804_v10  ;;  %v2615_v23 = vadd.f32 %v2614_v34, %v2613_v12  ;;  %v2616_v36 = vpop.f32.mrb[34].mxu1 }
 0x30f   : > { %v2617_v14 = vpop.f32.mrb[35].mxu1 }
 0x310   : > { %v1758_v37 = vadd.f32 %v2615_v23, %v3821_v40  ;;  %v2618_v24 = vadd.f32 %v2617_v14, %v2616_v36  ;;  %2681 = vmatmul.mubr.bf16.vlgmr.msra.gmra.mrb[56].mxu1 %v1818_v13  ;;  %v2500_v14 = vld [vmem:[%s3949_s6] ss:$0 sm:$0xff] }
 0x311   : > { %2684 = vmatprep.mubr.msk.bf16.mxu1 %vm3370_vm1, %v3369_v9 }
 0x312   : > { %v1761_v38 = vadd.f32 %v2618_v24, %v3821_v40  ;;  %v1806_v39 = vmax.f32 %v1758_v37, 0.0 }
 0x314   : > { %v1807_v42 = vmax.f32 %v1761_v38, 0.0  ;;  %v2619_v25 = vpop.f32.mrb[36].mxu1 }
 0x315   : > { %v2620_v43 = vpop.f32.mrb[37].mxu1 }
 0x316   : > { %v2621_v44 = vadd.f32 %v2620_v43, %v2619_v25  ;;  %v2622_v26 = vpop.f32.mrb[38].mxu1  ;;  %v1819_v45 = vpack.c.bf16 %v1807_v42, %v1806_v39 }
 0x317   : > { %v2623_v15 = vpop.f32.mrb[39].mxu1 }
 0x318   : > { %v1766_v46 = vadd.f32 %v2621_v44, %v3821_v40  ;;  %v2624_v47 = vadd.f32 %v2623_v15, %v2622_v26  ;;  %2685 = vmatmul.mubr.bf16.gmra.mrb[60].mxu1 %v1819_v45 }
 0x319   : > { %2688 = vmatprep.mubr.msk.bf16.mxu1 %vm3370_vm1, %v3369_v9 }
 0x31a   : > { %v1769_v48 = vadd.f32 %v2624_v47, %v3821_v40  ;;  %v1808_v16 = vmax.f32 %v1766_v46, 0.0 }
 0x31c   : > { %v1809_v49 = vmax.f32 %v1769_v48, 0.0  ;;  %v2625_v50 = vpop.f32.mrb[40].mxu1 }
 0x31d   : > { %v2626_v27 = vpop.f32.mrb[41].mxu1 }
 0x31e   : > { %v2627_v51 = vadd.f32 %v2626_v27, %v2625_v50  ;;  %v2628_v52 = vpop.f32.mrb[42].mxu1  ;;  %v1820_v17 = vpack.c.bf16 %v1809_v49, %v1808_v16 }
 0x31f   : > { %v2629_v53 = vpop.f32.mrb[43].mxu1 }
 0x320   : > { %v1774_v28 = vadd.f32 %v2627_v51, %v3821_v40  ;;  %v2630_v54 = vadd.f32 %v2629_v53, %v2628_v52  ;;  %2689 = vmatmul.mubr.bf16.gmra.mrb[64].mxu1 %v1820_v17 }
 0x321   : > { %2692 = vmatprep.mubr.msk.bf16.mxu1 %vm3370_vm1, %v3369_v9 }
 0x322   : > { %v1777_v18 = vadd.f32 %v2630_v54, %v3821_v40  ;;  %v1810_v55 = vmax.f32 %v1774_v28, 0.0 }
 0x324   : > { %v1811_v29 = vmax.f32 %v1777_v18, 0.0  ;;  %v2631_v56 = vpop.f32.mrb[44].mxu1 }
 0x325   : > { %v2632_v57 = vpop.f32.mrb[45].mxu1 }
 0x326   : > { %v2633_v30 = vadd.f32 %v2632_v57, %v2631_v56  ;;  %v2634_v58 = vpop.f32.mrb[46].mxu1  ;;  %v1821_v59 = vpack.c.bf16 %v1811_v29, %v1810_v55 }
 0x327   : > { %v2635_v60 = vpop.f32.mrb[47].mxu1 }
 0x328   : > { %v1782_v61 = vadd.f32 %v2633_v30, %v3821_v40  ;;  %v2636_v19 = vadd.f32 %v2635_v60, %v2634_v58  ;;  %2693 = vmatmul.mubr.bf16.gmra.mrb[68].mxu1 %v1821_v59 }
 0x329   : > { %2696 = vmatprep.mubr.msk.bf16.mxu1 %vm3370_vm1, %v3369_v9 }
 0x32a   : > { %v1785_v62 = vadd.f32 %v2636_v19, %v3821_v40  ;;  %v1812_v31 = vmax.f32 %v1782_v61, 0.0 }
 0x32c   : > { %v1813_v63 = vmax.f32 %v1785_v62, 0.0  ;;  %v2637_v0 = vpop.f32.mrb[48].mxu1 }
 0x32d   : > { %v2638_v20 = vpop.f32.mrb[49].mxu1 }
 0x32e   : > { %v2639_v32 = vadd.f32 %v2638_v20, %v2637_v0  ;;  %v2640_v1 = vpop.f32.mrb[50].mxu1  ;;  %v1822_v2 = vpack.c.bf16 %v1813_v63, %v1812_v31 }
 0x32f   : > { %v2641_v3 = vpop.f32.mrb[51].mxu1 }
 0x330   : > { %v1790_v4 = vadd.f32 %v2639_v32, %v3821_v40  ;;  %v2642_v33 = vadd.f32 %v2641_v3, %v2640_v1  ;;  %2697 = vmatmul.mubr.bf16.gmra.mrb[72].mxu1 %v1822_v2 }
 0x331   : > { %2700 = vmatprep.mubr.msk.bf16.mxu1 %vm3370_vm1, %v3369_v9 }
 0x332   : > { %v1793_v35 = vadd.f32 %v2642_v33, %v3821_v40  ;;  %v1814_v41 = vmax.f32 %v1790_v4, 0.0 }
 0x334   : > { %v1815_v21 = vmax.f32 %v1793_v35, 0.0  ;;  %v2643_v5 = vpop.f32.mrb[52].mxu1 }
 0x335   : > { %v2644_v6 = vpop.f32.mrb[53].mxu1 }
 0x336   : > { %v2645_v22 = vadd.f32 %v2644_v6, %v2643_v5  ;;  %v2646_v7 = vpop.f32.mrb[54].mxu1  ;;  %v1823_v8 = vpack.c.bf16 %v1815_v21, %v1814_v41 }
 0x337   : > { %v2647_v10 = vpop.f32.mrb[55].mxu1 }
 0x338   : > { %v1798_v11 = vadd.f32 %v2645_v22, %v3821_v40  ;;  %v2648_v12 = vadd.f32 %v2647_v10, %v2646_v7  ;;  %2701 = vmatmul.mubr.bf16.gmra.mrb[76].mxu1 %v1823_v8 }
 0x339   : > { %2704 = vmatprep.mubr.msk.bf16.mxu1 %vm3370_vm1, %v3369_v9 }
 0x33a   : > { %v1801_v34 = vadd.f32 %v2648_v12, %v3821_v40  ;;  %v1816_v13 = vmax.f32 %v1798_v11, 0.0 }
 0x33c   : > { %v1817_v23 = vmax.f32 %v1801_v34, 0.0 }
 0x33e   : > { %v1824_v36 = vpack.c.bf16 %v1817_v23, %v1816_v13 }
 0x340   : > { %2705 = vmatmul.mubr.bf16.gmra.mrb[80].mxu1 %v1824_v36 }
 0x3e3   : > { %v1930_v37 = vpop.f32.mrb[56].mxu1 }
 0x3e4   : > { %v2682_v24 = vpop.f32.mrb[57].mxu1  ;;  %v1931_v39 = vadd.f32 %v2500_v14, %v1930_v37 }
 0x3e5   : > { %v1933_v38 = vpop.f32.mrb[58].mxu1 }
 0x3e6   : > { %v1934_v42 = vadd.f32 %v2500_v14, %v1933_v38  ;;  %v2683_v25 = vpop.f32.mrb[59].mxu1 }
 0x3e8   : > { %v2553_v43 = vpack.c.bf16 %v1934_v42, %v1931_v39 }
 0x3ea   : > { %2554 = vst [vmem:[%s3853_s27] sm:$0xff] %v2553_v43  }
 0x3eb   : > { %v1938_v9 = vpop.f32.mrb[60].mxu1 }
 0x3ec   : > { %v2686_v40 = vpop.f32.mrb[61].mxu1  ;;  %v1939_v26 = vadd.f32 %v2500_v14, %v1938_v9 }
 0x3ed   : > { %v1941_v44 = vpop.f32.mrb[62].mxu1 }
 0x3ee   : > { %v1942_v45 = vadd.f32 %v2500_v14, %v1941_v44  ;;  %v2687_v15 = vpop.f32.mrb[63].mxu1 }
 0x3f0   : > { %v2558_v46 = vpack.c.bf16 %v1942_v45, %v1939_v26 }
 0x3f2   : > { %2585 = vst [vmem:[%s3853_s27 + $0x8] sm:$0xff] %v2558_v46  }
 0x3f3   : > { %v1946_v47 = vpop.f32.mrb[64].mxu1 }
 0x3f4   : > { %v2690_v48 = vpop.f32.mrb[65].mxu1  ;;  %v1947_v49 = vadd.f32 %v2500_v14, %v1946_v47 }
 0x3f5   : > { %v1949_v16 = vpop.f32.mrb[66].mxu1 }
 0x3f6   : > { %v1950_v50 = vadd.f32 %v2500_v14, %v1949_v16  ;;  %v2691_v27 = vpop.f32.mrb[67].mxu1 }
 0x3f8   : > { %v2563_v51 = vpack.c.bf16 %v1950_v50, %v1947_v49 }
 0x3fa   : > { %2586 = vst [vmem:[%s3853_s27 + $0x10] sm:$0xff] %v2563_v51  }
 0x3fb   : > { %v1954_v52 = vpop.f32.mrb[68].mxu1 }
 0x3fc   : > { %v2694_v17 = vpop.f32.mrb[69].mxu1  ;;  %v1955_v28 = vadd.f32 %v2500_v14, %v1954_v52 }
 0x3fd   : > { %v1957_v53 = vpop.f32.mrb[70].mxu1 }
 0x3fe   : > { %v1958_v54 = vadd.f32 %v2500_v14, %v1957_v53  ;;  %v2695_v18 = vpop.f32.mrb[71].mxu1 }
 0x400   : > { %v2568_v55 = vpack.c.bf16 %v1958_v54, %v1955_v28 }
 0x402   : > { %2587 = vst [vmem:[%s3853_s27 + $0x18] sm:$0xff] %v2568_v55  }
 0x403   : > { %v1962_v29 = vpop.f32.mrb[72].mxu1 }
 0x404   : > { %v2698_v56 = vpop.f32.mrb[73].mxu1  ;;  %v1963_v30 = vadd.f32 %v2500_v14, %v1962_v29 }
 0x405   : > { %v1965_v57 = vpop.f32.mrb[74].mxu1 }
 0x406   : > { %v1966_v58 = vadd.f32 %v2500_v14, %v1965_v57  ;;  %v2699_v59 = vpop.f32.mrb[75].mxu1 }
 0x408   : > { %v2573_v60 = vpack.c.bf16 %v1966_v58, %v1963_v30 }
 0x40a   : > { %2588 = vst [vmem:[%s3853_s27 + $0x20] sm:$0xff] %v2573_v60  }
 0x40b   : > { %v1970_v61 = vpop.f32.mrb[76].mxu1 }
 0x40c   : > { %v2702_v19 = vpop.f32.mrb[77].mxu1  ;;  %v1971_v31 = vadd.f32 %v2500_v14, %v1970_v61 }
 0x40d   : > { %v1973_v62 = vpop.f32.mrb[78].mxu1 }
 0x40e   : > { %v1974_v63 = vadd.f32 %v2500_v14, %v1973_v62  ;;  %v2703_v0 = vpop.f32.mrb[79].mxu1 }
 0x410   : > { %v2578_v20 = vpack.c.bf16 %v1974_v63, %v1971_v31 }
 0x412   : > { %2589 = vst [vmem:[%s3853_s27 + $0x28] sm:$0xff] %v2578_v20  }
 0x413   : > { %v1978_v32 = vpop.f32.mrb[80].mxu1 }
 0x414   : > { %v2706_v1 = vpop.f32.mrb[81].mxu1  ;;  %v1979_v3 = vadd.f32 %v2500_v14, %v1978_v32  ;;  %2061 = sbr.rel (!%p3973_p9) target bundleno = 1122 (0x462), region = 68 }
 0x415   : > { %v1981_v2 = vpop.f32.mrb[82].mxu1 }
 0x416   : > { %v1982_v4 = vadd.f32 %v2500_v14, %v1981_v2  ;;  %v2707_v33 = vpop.f32.mrb[83].mxu1 }
 0x418   : > { %v2583_v35 = vpack.c.bf16 %v1982_v4, %v1979_v3 }
 0x41a   : > { %2590 = vst [vmem:[%s3853_s27 + $0x30] sm:$0xff] %v2583_v35  }
 0x41b   : > { %s3985_s24 = smov (!%p2064_p12, %s2063_s24), 14 }
 0x41c   : > { %s2523_s9 = sshll.u32 %s3985_s24, 6 }
 0x41d   : > { %p2526_p0 = scmp.eq.s32.totalorder %s2523_s9, 0 }
 0x41e   : > { %3134 = sdivrem.u32 (!%p2526_p0), %s3985_s24, 14 }
 0x41f   : > { %2072 = sbr.rel (%p2526_p0) target bundleno = 1122 (0x462), region = 72 }
 0x427   : > { %s3875_s12 = spop.drf %3134 }
 0x428   : > { %p2527_p5 = scmp.le.s32.totalorder %s3875_s12, 0 }
 0x429   : > { %s3974_s28 = smov (!%p2527_p5), %s3869_s16  ;;  %s3975_s10 = smov (!%p2527_p5), %s3853_s27 }
 0x42a   : > { %2289 = sbr.rel (%p2527_p5) target bundleno = 1093 (0x445), region = 150  ;;  %s3884_s21 = smov (!%p2527_p5), 0  }
 0x42b   : > { %s3886_s8 = smov (!%p2527_p5), 0  }
 0x431 LB: >> { %v2089_v41 = vld [vmem:[%s3332_s10] sm:$0xf]  ;;  %v2091_v21 = vld [vmem:[%s3332_s10 + $0x4] sm:$0xf]  ;;  %v2093_v5 = vld [vmem:[%s3332_s10 + $0x8] sm:$0xf]  ;;  %s3340_s8 = sphi %s3886_s8, %s2083_s8   ;;  %s3336_s21 = sphi %s3884_s21, %s3976_s21   ;;  %s3332_s10 = sphi %s3975_s10, %s2122_s10   ;;  %s3328_s28 = sphi %s3974_s28, %s2123_s28  }
 0x432   : >> { %2090 = vst [vmem:[%s3328_s28] sm:$0xf] %v2089_v41  ;;  %2092 = vst [vmem:[%s3328_s28 + $0x4] sm:$0xf] %v2091_v21  ;;  %v2095_v6 = vld [vmem:[%s3332_s10 + $0xc] sm:$0xf]  ;;  %s2117_s15 = sadd.s32 1, %s3336_s21 }
 0x433   : >> { %2094 = vst [vmem:[%s3328_s28 + $0x8] sm:$0xf] %v2093_v5  ;;  %v2097_v22 = vld [vmem:[%s3332_s10 + $0x10] sm:$0xf]  ;;  %v2099_v7 = vld [vmem:[%s3332_s10 + $0x14] sm:$0xf]  ;;  %p2118_p1 = scmp.ge.s32.totalorder %s2117_s15, %s3875_s12 }
 0x434   : >> { %2096 = vst [vmem:[%s3328_s28 + $0xc] sm:$0xf] %v2095_v6  ;;  %2098 = vst [vmem:[%s3328_s28 + $0x10] sm:$0xf] %v2097_v22  ;;  %v2101_v8 = vld [vmem:[%s3332_s10 + $0x18] sm:$0xf] }
 0x435   : >> { %2100 = vst [vmem:[%s3328_s28 + $0x14] sm:$0xf] %v2099_v7  ;;  %v2103_v10 = vld [vmem:[%s3332_s10 + $0x1c] sm:$0xf]  ;;  %v2105_v11 = vld [vmem:[%s3332_s10 + $0x20] sm:$0xf] }
 0x436   : >> { %2102 = vst [vmem:[%s3328_s28 + $0x18] sm:$0xf] %v2101_v8  ;;  %2104 = vst [vmem:[%s3328_s28 + $0x1c] sm:$0xf] %v2103_v10  ;;  %v2107_v12 = vld [vmem:[%s3332_s10 + $0x24] sm:$0xf] }
 0x437   : >> { %2106 = vst [vmem:[%s3328_s28 + $0x20] sm:$0xf] %v2105_v11  ;;  %v2109_v34 = vld [vmem:[%s3332_s10 + $0x28] sm:$0xf]  ;;  %v2111_v13 = vld [vmem:[%s3332_s10 + $0x2c] sm:$0xf] }
 0x438   : >> { %2108 = vst [vmem:[%s3328_s28 + $0x24] sm:$0xf] %v2107_v12  ;;  %2110 = vst [vmem:[%s3328_s28 + $0x28] sm:$0xf] %v2109_v34  ;;  %v2113_v23 = vld [vmem:[%s3332_s10 + $0x30] sm:$0xf] }
 0x439   : >> { %2112 = vst [vmem:[%s3328_s28 + $0x2c] sm:$0xf] %v2111_v13  ;;  %v2115_v36 = vld [vmem:[%s3332_s10 + $0x34] sm:$0xf]  ;;  %2114 = vst [vmem:[%s3328_s28 + $0x30] sm:$0xf] %v2113_v23 }
 0x43a   : >> { %2116 = vst [vmem:[%s3328_s28 + $0x34] sm:$0xf] %v2115_v36  ;;  %s3987_s15 = smov (%p2118_p1, %s2117_s15), 0  ;;  %s2083_s8 = sadd.s32 1, %s3340_s8  }
 0x43b   : >> { %s2120_s18 = smul.u32 56, %s3987_s15  ;;  %p2082_p4 = scmp.ge.s32.totalorder %s2083_s8, %s3875_s12 }
 0x43c   : >> { %s3976_s21 = smov %s3987_s15 }
 0x43d   : >> { %s2122_s10 = scalar_lea.vmem %s3853_s27, %s2120_s18 [#allocation9]   ;;  %s2123_s28 = scalar_lea.vmem %s3869_s16, %s2120_s18  }
 0x43e   : > { %2085 = sbr.rel (!%p2082_p4) target bundleno = 1073 (0x431), region = 156 }
 0x445 PF: > { %3136 = sdivrem.u32 %s3985_s24, 14 }
 0x446   : > { %s2528_s11 = smul.u32 56, %s3875_s12 }
 0x448   : > { %s2128_s13 = scalar_lea.vmem %s3853_s27, %s2528_s11 [#allocation9]   ;;  %s2130_s23 = scalar_lea.vmem %s3869_s16, %s2528_s11  }
 0x44e   : > { %s3137_s30 = spop.drf %3136 }
 0x44f   : > { %p2530_p8 = scmp.le.s32.totalorder %s3137_s30, 0 }
 0x450   : > { %s3342_s29 = smov (!%p2530_p8), %s2130_s23   ;;  %s3346_s14 = smov (!%p2530_p8), %s2128_s13  }
 0x451   : > { %2303 = sbr.rel (%p2530_p8) target bundleno = 1122 (0x462), region = 161  ;;  %s3350_s17 = smov (!%p2530_p8), 0  }
 0x452   : > { %s3354_s19 = smov (!%p2530_p8), 0  }
 0x458 LB: >> { %v2140_v14 = vld [vmem:[%s3348_s14] sm:$0xf]  ;;  %s2142_s1 = sadd.s32 1, %s3352_s17  ;;  %s2134_s19 = sadd.s32 1, %s3356_s19   ;;  %s3356_s19 = sphi %s3354_s19, %s2134_s19   ;;  %s3352_s17 = sphi %s3350_s17, %s3351_s17   ;;  %s3348_s14 = sphi %s3346_s14, %s2147_s14   ;;  %s3344_s29 = sphi %s3342_s29, %s2148_s29  }
 0x459   : >> { %2141 = vst [vmem:[%s3344_s29] sm:$0xf] %v2140_v14  ;;  %p2143_p11 = scmp.ge.s32.totalorder %s2142_s1, %s3137_s30  ;;  %p2133_p10 = scmp.ge.s32.totalorder %s2134_s19, %s3137_s30 }
 0x45b   : >> { %s3989_s1 = smov (%p2143_p11, %s2142_s1), 0  ;;  %2136 = sbr.rel (!%p2133_p10) target bundleno = 1112 (0x458), region = 167 }
 0x45c   : >> { %s2531_s27 = sshll.u32 %s3989_s1, 2  ;;  %s3351_s17 = smov %s3989_s1  }
 0x45d   : >> { %s2147_s14 = scalar_lea.vmem %s2128_s13, %s2531_s27 [#allocation9]   ;;  %s2148_s29 = scalar_lea.vmem %s2130_s23, %s2531_s27  }
 0x462 PF: > { %s3977_s27 = sld [smem:[#allocation13_spill]]  ;;  %s3978_s20 = sld [smem:[#allocation14_spill]] }
 0x463   : > { %s3979_s24 = smov %s3316_s25  ;;  %s3980_s25 = smov %s3320_s26 }
 0x468   : > { %p19_p2 = scmp.ge.s32.totalorder %s3977_s27, 4   ;;  %s3981_s26 = smov %s3978_s20 }
 0x46a   :  { %21 = sbr.rel (!%p19_p2) target bundleno = 7 (0x7), region = 178 }
 0x471   :  { %2236 = vsyncpa [#allocation3], 1 }
 0x472   :  { %2238 = vsyncpa [#allocation3 + $0x1], 1 }
 0x473   :  { %2239 = vsyncpa [#allocation5], 1 }
 0x474   :  { %2240 = vsyncpa [#allocation8], 1 }

</bundles_post_ra>
